<compile_context>
chip_gen: v5e
topology: v5e:2x2
jax: 0.10.0
libtpu: 0.0.40
codegen_flags: <defaults>
</compile_context>

<pallas_src>
import jax
import jax.numpy as jnp
from jax.experimental import pallas as pl
from jax.experimental.pallas import tpu as pltpu


def _matmul_tt_tiled_kernel(x1_ref, x2_ref, o_ref, acc_ref):
    # x1_ref: (tm, tk), x2_ref: (tp, tm), o_ref: (tk, tp), acc_ref: (tp, tk) f32
    # Standard contraction on the MXU: (tp, tm) @ (tm, tk) -> (tp, tk)
    prod = jnp.dot(x2_ref[...], x1_ref[...], preferred_element_type=jnp.float32)

    @pl.when(pl.program_id(3) == 0)
    def _first():
        # Direct write on the first reduction step: no zero-init + RMW.
        acc_ref[...] = prod

    @pl.when(pl.program_id(3) > 0)
    def _accumulate():
        acc_ref[...] += prod

    @pl.when(pl.program_id(3) == pl.num_programs(3) - 1)
    def _finish():
        # Single per-output-tile transpose on the f32 accumulator.
        o_ref[...] = acc_ref[...].T.astype(o_ref.dtype)


def _pick_tile(dim, candidates=(512, 256, 128)):
    for t in candidates:
        if dim % t == 0:
            return t
    return None


def _round_up(n, m):
    return ((n + m - 1) // m) * m


def _pad_last2(a, d1, d2):
    b, s1, s2 = a.shape
    if s1 == d1 and s2 == d2:
        return a
    return jnp.pad(a, ((0, 0), (0, d1 - s1), (0, d2 - s2)))


def model_forward(x1, x2, *, allow_bf16=True, input_buffering=2):
    """Pallas equivalent of Model.forward(x1, x2): matmul(x1^T, x2^T) per batch.

    x1: (B, M, K), x2: (B, P, M)  ->  (B, K, P)
    """
    B, M, K = x1.shape
    B2, P, M2 = x2.shape
    assert B == B2 and M == M2, "shape mismatch for x1^T @ x2^T"
    out_dtype = x1.dtype

    # Tiny problems (e.g. the module's (1,2,2) inputs): a custom kernel would
    # use <1% of the MXU and be dominated by pallas_call per-step overhead;
    # XLA's fused batched matmul wins.  Pin precision so f32 stays f32 here.
    if min(M, K, P) < 128:
        return jnp.matmul(jnp.swapaxes(x1, 1, 2), jnp.swapaxes(x2, 1, 2),
                          precision=jax.lax.Precision.HIGHEST)

    # bf16 operands: halves HBM traffic, full MXU rate.  Accumulation is f32
    # and the output is cast back to the original dtype.  (Default MXU
    # precision already rounds f32 operands to bf16, so fidelity is similar.)
    if allow_bf16 and x1.dtype == jnp.float32:
        x1 = x1.astype(jnp.bfloat16)
        x2 = x2.astype(jnp.bfloat16)

    # Pad to multiples of 128 so the tiled path always applies (zero padding
    # along the reduction dim contributes nothing to the sum).
    Mp, Kp, Pp = _round_up(M, 128), _round_up(K, 128), _round_up(P, 128)
    x1p = _pad_last2(x1, Mp, Kp)   # (B, Mp, Kp)
    x2p = _pad_last2(x2, Pp, Mp)   # (B, Pp, Mp)

    tk = _pick_tile(Kp)            # output sublane tile
    tp = _pick_tile(Pp)            # output lane tile (multiple of 128)
    tm = _pick_tile(Mp)            # reduction tile
    assert tk is not None and tp is not None and tm is not None

    # Megacore: keep >= 2 parallel output tiles so both v7x TensorCores get
    # work; prefer splitting P (keeps the output lane-dense at >= 128 wide).
    if B * (Kp // tk) * (Pp // tp) < 2:
        if tp > 128 and (Pp // (tp // 2)) >= 2:
            tp //= 2
        elif tk > 128 and (Kp // (tk // 2)) >= 2:
            tk //= 2

    n_buf = max(2, int(input_buffering))
    in_itemsize = jnp.dtype(x1p.dtype).itemsize
    out_itemsize = jnp.dtype(out_dtype).itemsize
    working_set = (n_buf * (tm * tk + tp * tm) * in_itemsize   # pipelined inputs
                   + 2 * tk * tp * out_itemsize                # pipelined output
                   + tp * tk * 4)                              # f32 accumulator
    compiler_kwargs = {
        "dimension_semantics": ("parallel", "parallel", "parallel", "arbitrary"),
    }
    if working_set + (8 << 20) > (32 << 20):
        # Raise the scoped-VMEM limit only when needed; leave headroom under
        # v7x's 64 MiB physical VMEM.
        compiler_kwargs["vmem_limit_bytes"] = min(working_set + (8 << 20), 56 << 20)

    def _in_spec(block_shape, index_map):
        if n_buf > 2:
            # Deeper input pipelining, e.g. on v5e if DMA is exposed at
            # reduction-tile boundaries.
            return pl.BlockSpec(block_shape, index_map,
                                pipeline_mode=pl.Buffered(n_buf))
        return pl.BlockSpec(block_shape, index_map)

    grid = (B, Kp // tk, Pp // tp, Mp // tm)
    out_padded = pl.pallas_call(
        _matmul_tt_tiled_kernel,
        out_shape=jax.ShapeDtypeStruct((B, Kp, Pp), out_dtype),
        grid_spec=pltpu.PrefetchScalarGridSpec(
            num_scalar_prefetch=0,
            grid=grid,
            in_specs=[
                _in_spec((pl.Squeezed(), tm, tk),
                         lambda b, ki, pi, mi: (b, mi, ki)),
                _in_spec((pl.Squeezed(), tp, tm),
                         lambda b, ki, pi, mi: (b, pi, mi)),
            ],
            out_specs=pl.BlockSpec((pl.Squeezed(), tk, tp),
                                   lambda b, ki, pi, mi: (b, ki, pi)),
            scratch_shapes=[pltpu.VMEM((tp, tk), jnp.float32)],
        ),
        compiler_params=pltpu.CompilerParams(**compiler_kwargs),
    )(x1p, x2p)

    if (Kp, Pp) != (K, P):
        out_padded = out_padded[:, :K, :P]
    return out_padded


def model_forward_ref(x1, x2):
    # pure-JAX reference: matmul(x1^T, x2^T)
    return jnp.matmul(jnp.swapaxes(x1, 1, 2), jnp.swapaxes(x2, 1, 2),
                      precision=jax.lax.Precision.HIGHEST)


if __name__ == "__main__":
    key = jax.random.PRNGKey(0)
    k1, k2, k3, k4, k5, k6 = jax.random.split(key, 6)

    # Case 1: module-sized inputs (torch.randn(1, 2, 2)); dispatches to the
    # fused XLA batched matmul (a 2x2 matmul would waste the MXU and be
    # dominated by pallas_call launch/step overhead).
    x1a = jax.random.normal(k1, (1, 2, 2), dtype=jnp.float32)
    x2a = jax.random.normal(k2, (1, 2, 2), dtype=jnp.float32)
    out_a = jax.block_until_ready(model_forward(x1a, x2a))
    ref_a = model_forward_ref(x1a, x2a)
    assert out_a.shape == ref_a.shape, (out_a.shape, ref_a.shape)
    assert jnp.allclose(out_a, ref_a, atol=1e-5, rtol=1e-5), "tiny case mismatch"

    # Case 2: 128-aligned shapes exercising the tiled accumulator path
    # (bf16 operands, f32 accumulation, 512-wide output lane tile).
    B, M, K, P = 2, 256, 256, 512
    x1b = jax.random.normal(k3, (B, M, K), dtype=jnp.float32)
    x2b = jax.random.normal(k4, (B, P, M), dtype=jnp.float32)
    out_b = jax.block_until_ready(model_forward(x1b, x2b))
    ref_b = model_forward_ref(x1b, x2b)
    assert out_b.shape == ref_b.shape, (out_b.shape, ref_b.shape)
    scale_b = float(jnp.max(jnp.abs(ref_b)))
    err_b = float(jnp.max(jnp.abs(out_b - ref_b)))
    assert err_b <= 2e-2 * scale_b + 1e-2, ("tiled case mismatch", err_b, scale_b)

    # Case 3: unaligned shapes -> zero-padded to multiples of 128, tiled path,
    # padding sliced off (also exercises the megacore tile-shrink heuristic).
    B, M, K, P = 1, 160, 130, 200
    x1c = jax.random.normal(k5, (B, M, K), dtype=jnp.float32)
    x2c = jax.random.normal(k6, (B, P, M), dtype=jnp.float32)
    out_c = jax.block_until_ready(model_forward(x1c, x2c))
    ref_c = model_forward_ref(x1c, x2c)
    assert out_c.shape == ref_c.shape, (out_c.shape, ref_c.shape)
    scale_c = float(jnp.max(jnp.abs(ref_c)))
    err_c = float(jnp.max(jnp.abs(out_c - ref_c)))
    assert err_c <= 2e-2 * scale_c + 1e-2, ("padded case mismatch", err_c, scale_c)

    print("KERNEL_OK")
</pallas_src>

<mosaic_0001>
module attributes {stable_mosaic.version = 11 : i64} {
  func.func @_matmul_tt_tiled_kernel(%arg0: i32, %arg1: i32, %arg2: i32, %arg3: i32, %arg4: memref<1x256x256xbf16, #tpu.memory_space<vmem>>, %arg5: memref<1x512x256xbf16, #tpu.memory_space<vmem>>, %arg6: memref<1x256x512xf32, #tpu.memory_space<vmem>>, %arg7: memref<512x256xf32, #tpu.memory_space<vmem>>) attributes {dimension_semantics = [#tpu.dimension_semantics<parallel>, #tpu.dimension_semantics<parallel>, #tpu.dimension_semantics<parallel>, #tpu.dimension_semantics<arbitrary>], iteration_bounds = array<i64: 2, 1, 1, 1>, scalar_prefetch = 0 : i64, scratch_operands = 1 : i64, tpu.core_type = #tpu.core_type<tc>, window_params = [{transform_indices = @transform_0, window_bounds = array<i64: 1, 256, 256>}, {transform_indices = @transform_1, window_bounds = array<i64: 1, 512, 256>}, {transform_indices = @transform_2, window_bounds = array<i64: 1, 256, 512>}]} {
    %c0 = arith.constant 0 : index
    %c0_0 = arith.constant 0 : index
    %c0_1 = arith.constant 0 : index
    %0 = vector.load %arg5[%c0, %c0_0, %c0_1] : memref<1x512x256xbf16, #tpu.memory_space<vmem>>, vector<1x512x256xbf16>
    %1 = vector.shape_cast %0 : vector<1x512x256xbf16> to vector<512x256xbf16>
    %c0_2 = arith.constant 0 : index
    %c0_3 = arith.constant 0 : index
    %c0_4 = arith.constant 0 : index
    %2 = vector.load %arg4[%c0_2, %c0_3, %c0_4] : memref<1x256x256xbf16, #tpu.memory_space<vmem>>, vector<1x256x256xbf16>
    %3 = vector.shape_cast %2 : vector<1x256x256xbf16> to vector<256x256xbf16>
    %cst = arith.constant dense<0.000000e+00> : vector<512x256xf32>
    %4 = tpu.matmul %1, %3, %cst {dimension_numbers = #tpu.dot_dimension_numbers<[1], [0], [0], [1], [0, 0, 1, 1], [], []>} : vector<512x256xbf16>, vector<256x256xbf16>, vector<512x256xf32> -> vector<512x256xf32>
    %c0_i32 = arith.constant 0 : i32
    %5 = arith.cmpi eq, %arg3, %c0_i32 : i32
    %6 = arith.extui %5 : i1 to i32
    %c0_i32_5 = arith.constant 0 : i32
    %7 = arith.cmpi ne, %6, %c0_i32_5 : i32
    scf.if %7 {
      %c0_10 = arith.constant 0 : index
      %c0_11 = arith.constant 0 : index
      %14 = vector.load %arg7[%c0_10, %c0_11] : memref<512x256xf32, #tpu.memory_space<vmem>>, vector<512x256xf32>
      tpu.vector_store %arg7[%c0_10, %c0_11], %4 {strides = array<i32>} : memref<512x256xf32, #tpu.memory_space<vmem>>, vector<512x256xf32>,
    } else {
    }
    %c0_i32_6 = arith.constant 0 : i32
    %8 = arith.cmpi sgt, %arg3, %c0_i32_6 : i32
    %9 = arith.extui %8 : i1 to i32
    %c0_i32_7 = arith.constant 0 : i32
    %10 = arith.cmpi ne, %9, %c0_i32_7 : i32
    scf.if %10 {
      %c0_10 = arith.constant 0 : index
      %c0_11 = arith.constant 0 : index
      %14 = vector.load %arg7[%c0_10, %c0_11] : memref<512x256xf32, #tpu.memory_space<vmem>>, vector<512x256xf32>
      %15 = arith.addf %14, %4 : vector<512x256xf32>
      %c0_12 = arith.constant 0 : index
      %c0_13 = arith.constant 0 : index
      %16 = vector.load %arg7[%c0_12, %c0_13] : memref<512x256xf32, #tpu.memory_space<vmem>>, vector<512x256xf32>
      tpu.vector_store %arg7[%c0_12, %c0_13], %15 {strides = array<i32>} : memref<512x256xf32, #tpu.memory_space<vmem>>, vector<512x256xf32>,
    } else {
    }
    %c0_i32_8 = arith.constant 0 : i32
    %11 = arith.cmpi eq, %arg3, %c0_i32_8 : i32
    %12 = arith.extui %11 : i1 to i32
    %c0_i32_9 = arith.constant 0 : i32
    %13 = arith.cmpi ne, %12, %c0_i32_9 : i32
    scf.if %13 {
      %c0_10 = arith.constant 0 : index
      %c0_11 = arith.constant 0 : index
      %14 = vector.load %arg7[%c0_10, %c0_11] : memref<512x256xf32, #tpu.memory_space<vmem>>, vector<512x256xf32>
      %15 = tpu.transpose %14, [1, 0] : vector<512x256xf32> -> vector<256x512xf32>
      %c0_12 = arith.constant 0 : index
      %c0_13 = arith.constant 0 : index
      %c0_14 = arith.constant 0 : index
      %16 = vector.load %arg6[%c0_12, %c0_13, %c0_14] : memref<1x256x512xf32, #tpu.memory_space<vmem>>, vector<1x256x512xf32>
      %17 = vector.shape_cast %16 : vector<1x256x512xf32> to vector<256x512xf32>
      %18 = vector.shape_cast %15 : vector<256x512xf32> to vector<1x256x512xf32>
      tpu.vector_store %arg6[%c0_12, %c0_13, %c0_14], %18 {strides = array<i32>} : memref<1x256x512xf32, #tpu.memory_space<vmem>>, vector<1x256x512xf32>,
    } else {
    }
    return
  }
  func.func @transform_0(%arg0: i32, %arg1: i32, %arg2: i32, %arg3: i32) -> (i32, i32, i32) {
    %c0_i32 = arith.constant 0 : i32
    return %arg0, %arg3, %arg1 : i32, i32, i32
  }
  func.func @transform_1(%arg0: i32, %arg1: i32, %arg2: i32, %arg3: i32) -> (i32, i32, i32) {
    %c0_i32 = arith.constant 0 : i32
    return %arg0, %arg2, %arg3 : i32, i32, i32
  }
  func.func @transform_2(%arg0: i32, %arg1: i32, %arg2: i32, %arg3: i32) -> (i32, i32, i32) {
    %c0_i32 = arith.constant 0 : i32
    return %arg0, %arg1, %arg2 : i32, i32, i32
  }
}

</mosaic_0001>

<bundles_post_ra>
// kernel: tpu_custom_call.1
= control target key start
LH: loop header
LB: loop body
LE: loop exit
PB: predicated region body
PF: predicated region fallthrough
CT: control target
= control target key end

     0   :  { %7 = vsyncpa [#allocation4], 0  ;;  %s3905_s0 = inlined_call_operand.hbm [shape: bf16[2,256,256], index: 0, kind: input, shape index: {}]   ;;  %s3906_s1 = inlined_call_operand.hbm [shape: bf16[2,512,256], index: 1, kind: input, shape index: {}]   ;;  %s3907_s2 = inlined_call_operand.hbm [shape: f32[2,256,512], index: 2, kind: output, shape index: {}]  }
   0x1   :  { %9 = vsyncpa [#allocation4 + $0x1], 0 }
   0x2   :  { %10 = vsyncpa [#allocation7], 0 }
   0x3   :  { %12 = vsyncpa [#allocation7 + $0x1], 0 }
   0x4   :  { %13 = vsyncpa [#allocation5], 0 }
   0x5   :  { %15 = vsyncpa [#allocation5 + $0x1], 0  ;;  %s3433_s9 = smov 0   ;;  %s3435_s10 = smov 0  }
   0x6   :  { %s3437_s11 = smov 0   ;;  %s3439_s12 = smov 0  }
   0x7   :  { %s3441_s13 = smov 0   ;;  %s3443_s14 = smov 0  }
   0x8 LB: > { %s2693_s15 = sadd.s32 4294967295, %s3412_s14   ;;  %s2694_s16 = sadd.s32 4294967294, %s3412_s14   ;;  %s3412_s14 = sphi %s3443_s14, %s21_s14   ;;  %s3408_s13 = sphi %s3441_s13, %s3917_s13   ;;  %s3404_s12 = sphi %s3439_s12, %s3916_s12   ;;  %s3400_s11 = sphi %s3437_s11, %s3915_s11   ;;  %s3396_s10 = sphi %s3435_s10, %s3914_s10   ;;  %s3392_s9 = sphi %s3433_s9, %s3913_s9  }
   0x9   : > { %s47_s17 = sadd.s32 1, %s3408_s13  ;;  %s58_s18 = sadd.s32 1, %s3400_s11 }
   0xa   : > { %p49_p0 = scmp.ge.s32.totalorder %s47_s17, 2  ;;  %p65_p1 = scmp.ne.s32.totalorder %s3400_s11, %s3396_s10 }
   0xb   : > { %p66_p2 = scmp.eq.s32.totalorder %s3412_s14, 0  ;;  %p71_p3 = scmp.ne.s32.totalorder %s3396_s10, %s3392_s9 }
   0xc   : > { %s3919_s17 = smov (%p49_p0, %s47_s17), 0  ;;  %p72_p5 = scmp.eq.s32.totalorder %s2693_s15, 0 }
   0xd   : > { %p3474_p4 = por %p66_p2, %p65_p1  ;;  %s51_s20 = ssub.s32 %s3408_s13, %s3919_s17 }
   0xe   : > { %p129_p6 = scmp.eq.s32.totalorder %s2693_s15, 1  ;;  %p56_p7 = scmp.eq.s32.totalorder %s51_s20, 0 }
   0xf   : > { %p3480_p8 = por %p72_p5, %p71_p3  ;;  %p135_p10 = scmp.eq.s32.totalorder %s2694_s16, 1 }
  0x10   : > { %p3484_p9 = por %p129_p6, %p65_p1  ;;  %p2696_p12 = scmp.ge.s32.totalorder %s3412_s14, 2 }
  0x11   : > { %s3489_s23 = scalar_select %p56_p7, %s3400_s11, %s58_s18  }
  0x12   : > { %p3491_p11 = por %p135_p10, %p71_p3  ;;  %p3212_p13 = scmp.lt.s32.totalorder %s3412_s14, 2 }
  0x13   : > { %s3498_s25 = sand.u32 1, %s3400_s11   ;;  %s3096_s27 = sshll.u32 %s3408_s13, 8 }
  0x14   : > { %s2697_s26 = sshll.u32 %s3498_s25, 8  ;;  %s169_s30 = scalar_lea.hbm %s3905_s0, %s3096_s27 }
  0x15   : > { %s159_s3 = scalar_lea.vmem [#allocation3], %s2697_s26  ;;  %s170_s5 = sshll.u32 %s169_s30, 4  ;;  %s171_s5 = int_to_ptr.hbm [resolvable:$true] %s170_s5 }
  0x16   : > { %s172_s4 = sshll.u32 %s159_s3, 4  ;;  %p3507_p0 = pnand %p3212_p13, %p3474_p4  ;;  %s173_s4 = int_to_ptr.vmem [resolvable:$true] %s172_s4 }
  0x17   : > { %p2703_p1 = scmp.ge.s32.totalorder %s3412_s14, 1  ;;  %s156_s7 = scalar_lea.sflag [#allocation4], %s3498_s25 }
  0x18   : > { %s3414_s8 = smov 128   ;;  %s3415_s15 = smov 8  }
  0x19   : > { %3204 = dma.hbm_to_vmem [thread:$0]  (!%p3507_p0), %s171_s5, 4096, %s173_s4, %s156_s7, %s3414_s8, %s3414_s8, %s3415_s15  }
  0x1a   : > { %p207_p2 = scmp.lt.s32.totalorder %s3412_s14, 3  ;;  %s2700_s16 = sshll.u32 %s3498_s25, 9 }
  0x1b   : > { %s3097_s18 = sshll.u32 %s3408_s13, 9  ;;  %s186_s27 = scalar_lea.vmem [#allocation6], %s2700_s16 }
  0x1c   : > { %p208_p3 = pnand %p2703_p1, %p207_p2  ;;  %s196_s19 = scalar_lea.hbm %s3906_s1, %s3097_s18 }
  0x1d   : > { %s199_s28 = sshll.u32 %s186_s27, 4  ;;  %s197_s29 = sshll.u32 %s196_s19, 4  ;;  %s200_s28 = int_to_ptr.vmem [resolvable:$true] %s199_s28  ;;  %s198_s29 = int_to_ptr.hbm [resolvable:$true] %s197_s29 }
  0x1e   : > { %s183_s30 = scalar_lea.sflag [#allocation7], %s3498_s25  ;;  %211 = sbr.rel (%p208_p3) target bundleno = 883 (0x373), region = 28 }
  0x1f   : > { %3207 = dma.hbm_to_vmem [thread:$0]  (!%p3507_p0), %s198_s29, 8192, %s200_s28, %s183_s30, %s3414_s8, %s3414_s8, %s3415_s15  }
  0x20   : > { %s3525_s3 = sand.u32 (!%p208_p3), 1, %s3396_s10  }
  0x21   : > { %s2704_s4 = sshll.u32 (!%p208_p3), %s3525_s3, 8  ;;  %s214_s5 = scalar_lea.sflag (!%p208_p3), [#allocation4], %s3525_s3 }
  0x22   : > { %s3529_s7 = scalar_lea.vmem (!%p208_p3), [#allocation3], %s2704_s4 }
  0x23   : > { %3379 = dma.done.wait (%p3480_p8), %s214_s5, 4096  }
  0x24   : > { %3381 = vsyncadd (%p3480_p8), %s214_s5, 4294963200  ;;  %s2705_s25 = sshll.u32 %s3525_s3, 9  ;;  %s224_s6 = scalar_lea.sflag [#allocation7], %s3525_s3 }
  0x25   : > { %s3537_s8 = scalar_lea.vmem [#allocation6], %s2705_s25 }
  0x26   : > { %3383 = dma.done.wait (%p3480_p8), %s224_s6, 8192  }
  0x27   : > { %3385 = vsyncadd (%p3480_p8), %s224_s6, 4294959104  ;;  %v3021_v0 = vld [vmem:[%s3529_s7 + $0x70] sm:$0xf]  ;;  %v3177_v1 = vld [vmem:[%s3529_s7 + $0x74] sm:$0xf0]  ;;  %s2706_s21 = sshll.u32 %s3525_s3, 10 }
  0x28   : > { %v3085_v2 = vld [vmem:[%s3529_s7 + $0xf0] sm:$0xf]  ;;  %v3022_v3 = vor.u32 %v3177_v1, %v3021_v0  ;;  %v3193_v4 = vld [vmem:[%s3529_s7 + $0xf4] sm:$0xf0]  ;;  %v3176_v5 = vld [vmem:[%s3529_s7 + $0x74] sm:$0xf] }
  0x29   : > { %v3023_v6 = vld [vmem:[%s3529_s7 + $0x78] sm:$0xf0]  ;;  %v3086_v7 = vor.u32 %v3193_v4, %v3085_v2  ;;  %v3192_v9 = vld [vmem:[%s3529_s7 + $0xf4] sm:$0xf]  ;;  %v3013_v11 = vld [vmem:[%s3529_s7 + $0x60] sm:$0xf] }
  0x2a   : > { %v3026_v8 = vor.u32 %v3176_v5, %v3023_v6  ;;  %v3087_v10 = vld [vmem:[%s3529_s7 + $0xf8] sm:$0xf0]  ;;  %836 = vmatpush.bf16.msra.mxu0 %v3022_v3  ;;  %v3175_v13 = vld [vmem:[%s3529_s7 + $0x64] sm:$0xf0]  ;;  %v3077_v14 = vld [vmem:[%s3529_s7 + $0xe0] sm:$0xf] }
  0x2b   : > { %v3090_v12 = vor.u32 %v3192_v9, %v3087_v10  ;;  %v3191_v15 = vld [vmem:[%s3529_s7 + $0xe4] sm:$0xf0]  ;;  %1005 = vmatpush.bf16.msra.mxu1 %v3086_v7  ;;  %v3014_v16 = vor.u32 %v3175_v13, %v3013_v11  ;;  %v3174_v18 = vld [vmem:[%s3529_s7 + $0x64] sm:$0xf]  ;;  %v3015_v19 = vld [vmem:[%s3529_s7 + $0x68] sm:$0xf0] }
  0x2c   : > { %1174 = vmatpush.bf16.msra.mxu2 %v3026_v8  ;;  %v3078_v17 = vor.u32 %v3191_v15, %v3077_v14  ;;  %v3190_v20 = vld [vmem:[%s3529_s7 + $0xe4] sm:$0xf]  ;;  %v3018_v21 = vor.u32 %v3174_v18, %v3015_v19  ;;  %v3079_v22 = vld [vmem:[%s3529_s7 + $0xe8] sm:$0xf0]  ;;  %v3005_v23 = vld [vmem:[%s3529_s7 + $0x50] sm:$0xf] }
  0x2d   : > { %1343 = vmatpush.bf16.msra.mxu3 %v3090_v12  ;;  %v3173_v24 = vld [vmem:[%s3529_s7 + $0x54] sm:$0xf0]  ;;  %v3082_v25 = vor.u32 %v3190_v20, %v3079_v22  ;;  %v3069_v26 = vld [vmem:[%s3529_s7 + $0xd0] sm:$0xf]  ;;  %v3172_v28 = vld [vmem:[%s3529_s7 + $0x54] sm:$0xf] }
  0x2e   : > { %v3189_v27 = vld [vmem:[%s3529_s7 + $0xd4] sm:$0xf0]  ;;  %837 = vmatpush.bf16.msra.mxu0 %v3014_v16  ;;  %v3006_v29 = vor.u32 %v3173_v24, %v3005_v23  ;;  %v3007_v30 = vld [vmem:[%s3529_s7 + $0x58] sm:$0xf0]  ;;  %v3188_v31 = vld [vmem:[%s3529_s7 + $0xd4] sm:$0xf] }
  0x2f   : > { %v3071_v32 = vld [vmem:[%s3529_s7 + $0xd8] sm:$0xf0]  ;;  %1006 = vmatpush.bf16.msra.mxu1 %v3078_v17  ;;  %v3070_v33 = vor.u32 %v3189_v27, %v3069_v26  ;;  %v3010_v34 = vor.u32 %v3172_v28, %v3007_v30  ;;  %v2997_v35 = vld [vmem:[%s3529_s7 + $0x40] sm:$0xf]  ;;  %v3171_v36 = vld [vmem:[%s3529_s7 + $0x44] sm:$0xf0] }
  0x30   : > { %1175 = vmatpush.bf16.msra.mxu2 %v3018_v21  ;;  %v3061_v37 = vld [vmem:[%s3529_s7 + $0xc0] sm:$0xf]  ;;  %v3074_v38 = vor.u32 %v3188_v31, %v3071_v32  ;;  %v3187_v39 = vld [vmem:[%s3529_s7 + $0xc4] sm:$0xf0]  ;;  %v3170_v40 = vld [vmem:[%s3529_s7 + $0x44] sm:$0xf]  ;;  %v2998_v44 = vor.u32 %v3171_v36, %v2997_v35 }
  0x31   : > { %1344 = vmatpush.bf16.msra.mxu3 %v3082_v25  ;;  %v2999_v41 = vld [vmem:[%s3529_s7 + $0x48] sm:$0xf0]  ;;  %v3186_v42 = vld [vmem:[%s3529_s7 + $0xc4] sm:$0xf]  ;;  %v3062_v45 = vor.u32 %v3187_v39, %v3061_v37  ;;  %v2989_v47 = vld [vmem:[%s3529_s7 + $0x30] sm:$0xf] }
  0x32   : > { %v3063_v43 = vld [vmem:[%s3529_s7 + $0xc8] sm:$0xf0]  ;;  %838 = vmatpush.bf16.msra.mxu0 %v3006_v29  ;;  %v3002_v46 = vor.u32 %v3170_v40, %v2999_v41  ;;  %v3169_v48 = vld [vmem:[%s3529_s7 + $0x34] sm:$0xf0]  ;;  %v3053_v49 = vld [vmem:[%s3529_s7 + $0xb0] sm:$0xf] }
  0x33   : > { %1007 = vmatpush.bf16.msra.mxu1 %v3070_v33  ;;  %v3066_v50 = vor.u32 %v3186_v42, %v3063_v43  ;;  %v3185_v51 = vld [vmem:[%s3529_s7 + $0xb4] sm:$0xf0]  ;;  %v3168_v52 = vld [vmem:[%s3529_s7 + $0x34] sm:$0xf]  ;;  %v2991_v53 = vld [vmem:[%s3529_s7 + $0x38] sm:$0xf0]  ;;  %v2990_v56 = vor.u32 %v3169_v48, %v2989_v47 }
  0x34   : > { %1176 = vmatpush.bf16.msra.mxu2 %v3010_v34  ;;  %v3184_v54 = vld [vmem:[%s3529_s7 + $0xb4] sm:$0xf]  ;;  %v3055_v55 = vld [vmem:[%s3529_s7 + $0xb8] sm:$0xf0]  ;;  %v3054_v57 = vor.u32 %v3185_v51, %v3053_v49  ;;  %v2994_v58 = vor.u32 %v3168_v52, %v2991_v53  ;;  %v2981_v59 = vld [vmem:[%s3529_s7 + $0x20] sm:$0xf] }
  0x35   : > { %1345 = vmatpush.bf16.msra.mxu3 %v3074_v38  ;;  %v3167_v60 = vld [vmem:[%s3529_s7 + $0x24] sm:$0xf0]  ;;  %v3045_v61 = vld [vmem:[%s3529_s7 + $0xa0] sm:$0xf]  ;;  %v3058_v62 = vor.u32 %v3184_v54, %v3055_v55  ;;  %v3166_v0 = vld [vmem:[%s3529_s7 + $0x24] sm:$0xf] }
  0x36   : > { %839 = vmatpush.bf16.msra.mxu0 %v2998_v44  ;;  %v3183_v63 = vld [vmem:[%s3529_s7 + $0xa4] sm:$0xf0]  ;;  %v2983_v1 = vld [vmem:[%s3529_s7 + $0x28] sm:$0xf0]  ;;  %v3182_v2 = vld [vmem:[%s3529_s7 + $0xa4] sm:$0xf]  ;;  %v2982_v4 = vor.u32 %v3167_v60, %v2981_v59 }
  0x37   : > { %1008 = vmatpush.bf16.msra.mxu1 %v3062_v45  ;;  %v3047_v3 = vld [vmem:[%s3529_s7 + $0xa8] sm:$0xf0]  ;;  %v3046_v5 = vor.u32 %v3183_v63, %v3045_v61  ;;  %v2986_v6 = vor.u32 %v3166_v0, %v2983_v1  ;;  %v2973_v7 = vld [vmem:[%s3529_s7 + $0x10] sm:$0xf]  ;;  %v3165_v8 = vld [vmem:[%s3529_s7 + $0x14] sm:$0xf0] }
  0x38   : > { %1177 = vmatpush.bf16.msra.mxu2 %v3002_v46  ;;  %v3037_v9 = vld [vmem:[%s3529_s7 + $0x90] sm:$0xf]  ;;  %v3050_v10 = vor.u32 %v3182_v2, %v3047_v3  ;;  %v3181_v11 = vld [vmem:[%s3529_s7 + $0x94] sm:$0xf0]  ;;  %v3164_v12 = vld [vmem:[%s3529_s7 + $0x14] sm:$0xf]  ;;  %v2974_v16 = vor.u32 %v3165_v8, %v2973_v7 }
  0x39   : > { %1346 = vmatpush.bf16.msra.mxu3 %v3066_v50  ;;  %v2975_v13 = vld [vmem:[%s3529_s7 + $0x18] sm:$0xf0]  ;;  %v3180_v14 = vld [vmem:[%s3529_s7 + $0x94] sm:$0xf]  ;;  %v3038_v17 = vor.u32 %v3181_v11, %v3037_v9  ;;  %v2965_v19 = vld [vmem:[%s3529_s7] sm:$0xf] }
  0x3a   : > { %840 = vmatpush.bf16.msra.mxu0 %v2990_v56  ;;  %v3039_v15 = vld [vmem:[%s3529_s7 + $0x98] sm:$0xf0]  ;;  %v2978_v18 = vor.u32 %v3164_v12, %v2975_v13  ;;  %v3163_v20 = vld [vmem:[%s3529_s7 + $0x4] sm:$0xf0]  ;;  %v3029_v21 = vld [vmem:[%s3529_s7 + $0x80] sm:$0xf] }
  0x3b   : > { %1009 = vmatpush.bf16.msra.mxu1 %v3054_v57  ;;  %v3042_v22 = vor.u32 %v3180_v14, %v3039_v15  ;;  %v3179_v23 = vld [vmem:[%s3529_s7 + $0x84] sm:$0xf0]  ;;  %v3162_v24 = vld [vmem:[%s3529_s7 + $0x4] sm:$0xf]  ;;  %v2967_v25 = vld [vmem:[%s3529_s7 + $0x8] sm:$0xf0]  ;;  %v2966_v28 = vor.u32 %v3163_v20, %v2965_v19 }
  0x3c   : > { %1178 = vmatpush.bf16.msra.mxu2 %v2994_v58  ;;  %v3178_v26 = vld [vmem:[%s3529_s7 + $0x84] sm:$0xf]  ;;  %v3031_v27 = vld [vmem:[%s3529_s7 + $0x88] sm:$0xf0]  ;;  %v2709_v29 = vld [vmem:[%s3537_s8] sm:$0xf]  ;;  %v3030_v31 = vor.u32 %v3179_v23, %v3029_v21  ;;  %v2970_v32 = vor.u32 %v3162_v24, %v2967_v25 }
  0x3d   : > { %1347 = vmatpush.bf16.msra.mxu3 %v3058_v62  ;;  %v3099_v30 = vld [vmem:[%s3537_s8 + $0x4] sm:$0xf0]  ;;  %v3098_v33 = vld [vmem:[%s3537_s8 + $0x4] sm:$0xf]  ;;  %v2711_v34 = vld [vmem:[%s3537_s8 + $0x8] sm:$0xf0]  ;;  %v3034_v35 = vor.u32 %v3178_v26, %v3031_v27 }
  0x3e   : > { %841 = vmatpush.bf16.msra.mxu0 %v2982_v4  ;;  %v2710_v36 = vor.u32 %v3099_v30, %v2709_v29  ;;  %v2714_v37 = vor.u32 %v3098_v33, %v2711_v34  ;;  %v2717_v38 = vld [vmem:[%s3537_s8 + $0x10] sm:$0xf]  ;;  %v3101_v39 = vld [vmem:[%s3537_s8 + $0x14] sm:$0xf0]  ;;  %v3100_v40 = vld [vmem:[%s3537_s8 + $0x14] sm:$0xf] }
  0x3f   : > { %1010 = vmatpush.bf16.msra.mxu1 %v3046_v5  ;;  %v2719_v41 = vld [vmem:[%s3537_s8 + $0x18] sm:$0xf0]  ;;  %v2718_v42 = vor.u32 %v3101_v39, %v2717_v38  ;;  %v2725_v44 = vld [vmem:[%s3537_s8 + $0x20] sm:$0xf]  ;;  %v3103_v45 = vld [vmem:[%s3537_s8 + $0x24] sm:$0xf0] }
  0x40   : > { %1179 = vmatpush.bf16.msra.mxu2 %v2986_v6  ;;  %v2722_v43 = vor.u32 %v3100_v40, %v2719_v41  ;;  %v3102_v46 = vld [vmem:[%s3537_s8 + $0x24] sm:$0xf]  ;;  %v2727_v47 = vld [vmem:[%s3537_s8 + $0x28] sm:$0xf0]  ;;  %v2726_v48 = vor.u32 %v3103_v45, %v2725_v44  ;;  %v2733_v50 = vld [vmem:[%s3537_s8 + $0x30] sm:$0xf] }
  0x41   : > { %1348 = vmatpush.bf16.msra.mxu3 %v3050_v10  ;;  %v2730_v49 = vor.u32 %v3102_v46, %v2727_v47  ;;  %v3105_v51 = vld [vmem:[%s3537_s8 + $0x34] sm:$0xf0]  ;;  %v3104_v52 = vld [vmem:[%s3537_s8 + $0x34] sm:$0xf]  ;;  %v2735_v53 = vld [vmem:[%s3537_s8 + $0x38] sm:$0xf0] }
  0x42   : > { %842 = vmatpush.bf16.msra.mxu0 %v2974_v16  ;;  %v2734_v54 = vor.u32 %v3105_v51, %v2733_v50  ;;  %v2738_v55 = vor.u32 %v3104_v52, %v2735_v53  ;;  %v2741_v56 = vld [vmem:[%s3537_s8 + $0x40] sm:$0xf]  ;;  %v3107_v57 = vld [vmem:[%s3537_s8 + $0x44] sm:$0xf0]  ;;  %v3106_v58 = vld [vmem:[%s3537_s8 + $0x44] sm:$0xf] }
  0x43   : > { %1011 = vmatpush.bf16.msra.mxu1 %v3038_v17  ;;  %v2743_v59 = vld [vmem:[%s3537_s8 + $0x48] sm:$0xf0]  ;;  %v2742_v60 = vor.u32 %v3107_v57, %v2741_v56  ;;  %v2749_v62 = vld [vmem:[%s3537_s8 + $0x50] sm:$0xf]  ;;  %v3109_v63 = vld [vmem:[%s3537_s8 + $0x54] sm:$0xf0] }
  0x44   : > { %1180 = vmatpush.bf16.msra.mxu2 %v2978_v18  ;;  %v2746_v61 = vor.u32 %v3106_v58, %v2743_v59  ;;  %v3108_v0 = vld [vmem:[%s3537_s8 + $0x54] sm:$0xf]  ;;  %v2751_v1 = vld [vmem:[%s3537_s8 + $0x58] sm:$0xf0]  ;;  %v2750_v2 = vor.u32 %v3109_v63, %v2749_v62  ;;  %v2757_v4 = vld [vmem:[%s3537_s8 + $0x60] sm:$0xf] }
  0x45   : > { %1349 = vmatpush.bf16.msra.mxu3 %v3042_v22  ;;  %v2754_v3 = vor.u32 %v3108_v0, %v2751_v1  ;;  %v3111_v5 = vld [vmem:[%s3537_s8 + $0x64] sm:$0xf0]  ;;  %v3110_v6 = vld [vmem:[%s3537_s8 + $0x64] sm:$0xf]  ;;  %v2759_v7 = vld [vmem:[%s3537_s8 + $0x68] sm:$0xf0] }
  0x46   : > { %843 = vmatpush.bf16.msra.mxu0 %v2966_v28  ;;  %v2758_v8 = vor.u32 %v3111_v5, %v2757_v4  ;;  %v2762_v9 = vor.u32 %v3110_v6, %v2759_v7  ;;  %v2765_v10 = vld [vmem:[%s3537_s8 + $0x70] sm:$0xf]  ;;  %v3113_v11 = vld [vmem:[%s3537_s8 + $0x74] sm:$0xf0]  ;;  %v3112_v12 = vld [vmem:[%s3537_s8 + $0x74] sm:$0xf] }
  0x47   : > { %1012 = vmatpush.bf16.msra.mxu1 %v3030_v31  ;;  %v2767_v13 = vld [vmem:[%s3537_s8 + $0x78] sm:$0xf0]  ;;  %v2766_v14 = vor.u32 %v3113_v11, %v2765_v10  ;;  %v2773_v16 = vld [vmem:[%s3537_s8 + $0x80] sm:$0xf]  ;;  %v3115_v17 = vld [vmem:[%s3537_s8 + $0x84] sm:$0xf0] }
  0x48   : > { %1181 = vmatpush.bf16.msra.mxu2 %v2970_v32  ;;  %v2770_v15 = vor.u32 %v3112_v12, %v2767_v13  ;;  %v3114_v18 = vld [vmem:[%s3537_s8 + $0x84] sm:$0xf]  ;;  %v2775_v19 = vld [vmem:[%s3537_s8 + $0x88] sm:$0xf0]  ;;  %v2774_v20 = vor.u32 %v3115_v17, %v2773_v16  ;;  %v2781_v31 = vld [vmem:[%s3537_s8 + $0x90] sm:$0xf] }
  0x49   : > { %1350 = vmatpush.bf16.msra.mxu3 %v3034_v35  ;;  %844 = vmatmul.bf16.vlgmr.msra.gmra.mxu0 %v2710_v36  ;;  %v2778_v22 = vor.u32 %v3114_v18, %v2775_v19  ;;  %v3117_v32 = vld [vmem:[%s3537_s8 + $0x94] sm:$0xf0]  ;;  %v3116_v33 = vld [vmem:[%s3537_s8 + $0x94] sm:$0xf]  ;;  %v2783_v34 = vld [vmem:[%s3537_s8 + $0x98] sm:$0xf0] }
  0x4a   : > { %1013 = vmatmul.bf16.vlgmr.msra.gmra.mxu1 %v2714_v37  ;;  %v2786_v39 = vor.u32 %v3116_v33, %v2783_v34  ;;  %v3119_v50 = vld [vmem:[%s3537_s8 + $0xa4] sm:$0xf0]  ;;  %v3118_v51 = vld [vmem:[%s3537_s8 + $0xa4] sm:$0xf]  ;;  %v2791_v52 = vld [vmem:[%s3537_s8 + $0xa8] sm:$0xf0] }
  0x4b   : > { %1182 = vmatmul.bf16.vlgmr.msra.gmra.mxu2 %v2710_v36  ;;  %v2782_v36 = vor.u32 %v3117_v32, %v2781_v31  ;;  %v2794_v57 = vor.u32 %v3118_v51, %v2791_v52  ;;  %v3121_v4 = vld [vmem:[%s3537_s8 + $0xb4] sm:$0xf0]  ;;  %v3120_v5 = vld [vmem:[%s3537_s8 + $0xb4] sm:$0xf]  ;;  %v2799_v6 = vld [vmem:[%s3537_s8 + $0xb8] sm:$0xf0] }
  0x4c   : > { %1351 = vmatmul.bf16.vlgmr.msra.gmra.mxu3 %v2714_v37  ;;  %v2802_v11 = vor.u32 %v3120_v5, %v2799_v6  ;;  %s3712_s15 = scalar_lea.vmem [#allocation8], %s2706_s21  ;;  %s3194_s16 = sshll.u32 %s3404_s12, 10 }
  0x4d   : > { %s2564_s26 = scalar_lea.hbm %s3907_s2, %s3194_s16  ;;  %s2565_s19 = sshll.u32 %s3712_s15, 4  ;;  %s2566_s19 = int_to_ptr.vmem [resolvable:$true] %s2565_s19 }
  0x4e   : > { %s2567_s27 = sshll.u32 %s2564_s26, 4  ;;  %s2548_s28 = scalar_lea.sflag [#allocation5], %s3525_s3  ;;  %s2568_s27 = int_to_ptr.hbm [resolvable:$true] %s2567_s27 }
  0x4f   : > { %s3340_s29 = sshra.s32 %s2568_s27, 4  ;;  %s3346_s5 = scalar_lea.hbm %s3907_s2, 2048  ;;  %s3341_s29 = int_to_ptr.hbm [resolvable:$true] %s3340_s29 }
  0x50   : > { %s3342_s30 = scalar_lea.hbm %s3341_s29, 1024  ;;  %p3347_p7 = scmp.lt.s32.totalorder %s3341_s29, %s3907_s2 }
  0x51   : > { %p3343_p4 = scmp.ne.s32.totalorder %s3341_s29, %s3342_s30  ;;  %p3348_p8 = scmp.lt.s32.totalorder %s3346_s5, %s3342_s30 }
  0x53   : > { %p3344_p5 = pnand %p3343_p4, %p3484_p9  ;;  %p3349_p10 = por %p3348_p8, %p3347_p7 }
  0x55   : > { %p3345_p6 = pneg %p3344_p5 }
  0x57   : > { %p3350_p13 = pnand %p3349_p10, %p3345_p6 }
  0x59   : > { %849 = vmatmul.bf16.gmra.mxu0 %v2718_v42 }
  0x5a   : > { %1018 = vmatmul.bf16.gmra.mxu1 %v2722_v43 }
  0x5b   : > { %1187 = vmatmul.bf16.gmra.mxu2 %v2718_v42 }
  0x5c   : > { %1356 = vmatmul.bf16.gmra.mxu3 %v2722_v43 }
  0x69   : > { %854 = vmatmul.bf16.gmra.mxu0 %v2726_v48 }
  0x6a   : > { %1023 = vmatmul.bf16.gmra.mxu1 %v2730_v49 }
  0x6b   : > { %1192 = vmatmul.bf16.gmra.mxu2 %v2726_v48 }
  0x6c   : > { %1361 = vmatmul.bf16.gmra.mxu3 %v2730_v49  ;;  %v2789_v49 = vld [vmem:[%s3537_s8 + $0xa0] sm:$0xf] }
  0x79   : > { %859 = vmatmul.bf16.gmra.mxu0 %v2734_v54 }
  0x7a   : > { %1028 = vmatmul.bf16.gmra.mxu1 %v2738_v55 }
  0x7b   : > { %1197 = vmatmul.bf16.gmra.mxu2 %v2734_v54  ;;  %v2790_v54 = vor.u32 %v3119_v50, %v2789_v49 }
  0x7c   : > { %1366 = vmatmul.bf16.gmra.mxu3 %v2738_v55 }
  0x89   : > { %864 = vmatmul.bf16.gmra.mxu0 %v2742_v60 }
  0x8a   : > { %1033 = vmatmul.bf16.gmra.mxu1 %v2746_v61 }
  0x8b   : > { %1202 = vmatmul.bf16.gmra.mxu2 %v2742_v60 }
  0x8c   : > { %1371 = vmatmul.bf16.gmra.mxu3 %v2746_v61 }
  0x99   : > { %869 = vmatmul.bf16.gmra.mxu0 %v2750_v2 }
  0x9a   : > { %1038 = vmatmul.bf16.gmra.mxu1 %v2754_v3 }
  0x9b   : > { %1207 = vmatmul.bf16.gmra.mxu2 %v2750_v2 }
  0x9c   : > { %1376 = vmatmul.bf16.gmra.mxu3 %v2754_v3  ;;  %v2797_v3 = vld [vmem:[%s3537_s8 + $0xb0] sm:$0xf] }
  0xa9   : > { %874 = vmatmul.bf16.gmra.mxu0 %v2758_v8 }
  0xaa   : > { %1043 = vmatmul.bf16.gmra.mxu1 %v2762_v9 }
  0xab   : > { %1212 = vmatmul.bf16.gmra.mxu2 %v2758_v8  ;;  %v2798_v8 = vor.u32 %v3121_v4, %v2797_v3 }
  0xac   : > { %1381 = vmatmul.bf16.gmra.mxu3 %v2762_v9 }
  0xb9   : > { %879 = vmatmul.bf16.gmra.mxu0 %v2766_v14 }
  0xba   : > { %1048 = vmatmul.bf16.gmra.mxu1 %v2770_v15 }
  0xbb   : > { %1217 = vmatmul.bf16.gmra.mxu2 %v2766_v14 }
  0xbc   : > { %1386 = vmatmul.bf16.gmra.mxu3 %v2770_v15 }
  0xc6   : > { %v845_v21 = vpop.f32.mrf.mxu0 }
  0xc7   : > { %v1014_v23 = vpop.f32.mrf.mxu1 }
  0xc8   : > { %v1015_v24 = vadd.f32 %v1014_v23, %v845_v21  ;;  %v2805_v21 = vld [vmem:[%s3537_s8 + $0xc0] sm:$0xf]  ;;  %v3122_v23 = vld [vmem:[%s3537_s8 + $0xc4] sm:$0xf] }
  0xc9   : > { %884 = vmatmul.bf16.gmra.mxu0 %v2774_v20 }
  0xca   : > { %1053 = vmatmul.bf16.gmra.mxu1 %v2778_v22  ;;  %2163 = vxpose.xlu0.b32.start [1/16] %v1015_v24, 128  ;;  %v2807_v24 = vld [vmem:[%s3537_s8 + $0xc8] sm:$0xf0] }
  0xcb   : > { %1222 = vmatmul.bf16.gmra.mxu2 %v2774_v20 }
  0xcc   : > { %1391 = vmatmul.bf16.gmra.mxu3 %v2778_v22  ;;  %v3123_v22 = vld [vmem:[%s3537_s8 + $0xc4] sm:$0xf0] }
  0xce   : > { %v1183_v25 = vpop.f32.mrf.mxu2  ;;  %v847_v27 = vpop.f32.mrf.mxu0 }
  0xcf   : > { %v1352_v26 = vpop.f32.mrf.mxu3  ;;  %v1016_v28 = vpop.f32.mrf.mxu1 }
  0xd0   : > { %v1353_v29 = vadd.f32 %v1352_v26, %v1183_v25  ;;  %v1017_v30 = vadd.f32 %v1016_v28, %v847_v27  ;;  %v2806_v26 = vor.u32 %v3123_v22, %v2805_v21 }
  0xd2   : > { %2195 = vxpose.xlu1.b32.start [1/16] %v1353_v29, 128  ;;  %2164 = vxpose.xlu0.b32.cont [2/16] %v1017_v30, 128  ;;  %v2810_v29 = vor.u32 %v3122_v23, %v2807_v24 }
  0xd6   : > { %v1185_v35 = vpop.f32.mrf.mxu2  ;;  %v850_v38 = vpop.f32.mrf.mxu0 }
  0xd7   : > { %v1354_v37 = vpop.f32.mrf.mxu3  ;;  %v1019_v40 = vpop.f32.mrf.mxu1 }
  0xd8   : > { %v1355_v41 = vadd.f32 %v1354_v37, %v1185_v35  ;;  %v1020_v42 = vadd.f32 %v1019_v40, %v850_v38  ;;  %v3125_v40 = vld [vmem:[%s3537_s8 + $0xd4] sm:$0xf0] }
  0xd9   : > { %889 = vmatmul.bf16.gmra.mxu0 %v2782_v36 }
  0xda   : > { %2196 = vxpose.xlu1.b32.cont [2/16] %v1355_v41, 128  ;;  %1058 = vmatmul.bf16.gmra.mxu1 %v2786_v39  ;;  %v3124_v41 = vld [vmem:[%s3537_s8 + $0xd4] sm:$0xf] }
  0xdb   : > { %1227 = vmatmul.bf16.gmra.mxu2 %v2782_v36  ;;  %2165 = vxpose.xlu0.b32.cont [3/16] %v1020_v42, 128  ;;  %v2815_v42 = vld [vmem:[%s3537_s8 + $0xd8] sm:$0xf0] }
  0xdc   : > { %1396 = vmatmul.bf16.gmra.mxu3 %v2786_v39  ;;  %v2813_v39 = vld [vmem:[%s3537_s8 + $0xd0] sm:$0xf] }
  0xde   : > { %v1188_v43 = vpop.f32.mrf.mxu2  ;;  %v852_v45 = vpop.f32.mrf.mxu0 }
  0xdf   : > { %v1357_v44 = vpop.f32.mrf.mxu3  ;;  %v1021_v47 = vpop.f32.mrf.mxu1 }
  0xe0   : > { %v1358_v46 = vadd.f32 %v1357_v44, %v1188_v43  ;;  %v1022_v48 = vadd.f32 %v1021_v47, %v852_v45  ;;  %v2814_v44 = vor.u32 %v3125_v40, %v2813_v39  ;;  %v2818_v47 = vor.u32 %v3124_v41, %v2815_v42 }
  0xe2   : > { %2197 = vxpose.xlu1.b32.cont [3/16] %v1358_v46, 128 }
  0xe3   : > { %2166 = vxpose.xlu0.b32.cont [4/16] %v1022_v48, 128 }
  0xe6   : > { %v1190_v53 = vpop.f32.mrf.mxu2  ;;  %v855_v56 = vpop.f32.mrf.mxu0 }
  0xe7   : > { %v1359_v55 = vpop.f32.mrf.mxu3  ;;  %v1024_v58 = vpop.f32.mrf.mxu1 }
  0xe8   : > { %v1360_v59 = vadd.f32 %v1359_v55, %v1190_v53  ;;  %v1025_v60 = vadd.f32 %v1024_v58, %v855_v56  ;;  %v3127_v58 = vld [vmem:[%s3537_s8 + $0xe4] sm:$0xf0] }
  0xe9   : > { %894 = vmatmul.bf16.gmra.mxu0 %v2790_v54 }
  0xea   : > { %2198 = vxpose.xlu1.b32.cont [4/16] %v1360_v59, 128  ;;  %1063 = vmatmul.bf16.gmra.mxu1 %v2794_v57  ;;  %v3126_v59 = vld [vmem:[%s3537_s8 + $0xe4] sm:$0xf] }
  0xeb   : > { %1232 = vmatmul.bf16.gmra.mxu2 %v2790_v54  ;;  %2167 = vxpose.xlu0.b32.cont [5/16] %v1025_v60, 128  ;;  %v2823_v60 = vld [vmem:[%s3537_s8 + $0xe8] sm:$0xf0] }
  0xec   : > { %1401 = vmatmul.bf16.gmra.mxu3 %v2794_v57  ;;  %v2821_v57 = vld [vmem:[%s3537_s8 + $0xe0] sm:$0xf] }
  0xee   : > { %v1193_v61 = vpop.f32.mrf.mxu2  ;;  %v857_v63 = vpop.f32.mrf.mxu0 }
  0xef   : > { %v1362_v62 = vpop.f32.mrf.mxu3  ;;  %v1026_v1 = vpop.f32.mrf.mxu1 }
  0xf0   : > { %v1363_v0 = vadd.f32 %v1362_v62, %v1193_v61  ;;  %v1027_v2 = vadd.f32 %v1026_v1, %v857_v63  ;;  %v2822_v62 = vor.u32 %v3127_v58, %v2821_v57  ;;  %v2826_v1 = vor.u32 %v3126_v59, %v2823_v60 }
  0xf2   : > { %2199 = vxpose.xlu1.b32.cont [5/16] %v1363_v0, 128 }
  0xf3   : > { %2168 = vxpose.xlu0.b32.cont [6/16] %v1027_v2, 128 }
  0xf6   : > { %v1195_v7 = vpop.f32.mrf.mxu2  ;;  %v860_v10 = vpop.f32.mrf.mxu0 }
  0xf7   : > { %v1364_v9 = vpop.f32.mrf.mxu3  ;;  %v1029_v12 = vpop.f32.mrf.mxu1 }
  0xf8   : > { %v1365_v13 = vadd.f32 %v1364_v9, %v1195_v7  ;;  %v1030_v14 = vadd.f32 %v1029_v12, %v860_v10  ;;  %v3129_v12 = vld [vmem:[%s3537_s8 + $0xf4] sm:$0xf0] }
  0xf9   : > { %899 = vmatmul.bf16.gmra.mxu0 %v2798_v8 }
  0xfa   : > { %2200 = vxpose.xlu1.b32.cont [6/16] %v1365_v13, 128  ;;  %1068 = vmatmul.bf16.gmra.mxu1 %v2802_v11  ;;  %v3128_v13 = vld [vmem:[%s3537_s8 + $0xf4] sm:$0xf] }
  0xfb   : > { %1237 = vmatmul.bf16.gmra.mxu2 %v2798_v8  ;;  %2169 = vxpose.xlu0.b32.cont [7/16] %v1030_v14, 128  ;;  %v2831_v14 = vld [vmem:[%s3537_s8 + $0xf8] sm:$0xf0] }
  0xfc   : > { %1406 = vmatmul.bf16.gmra.mxu3 %v2802_v11  ;;  %v2829_v11 = vld [vmem:[%s3537_s8 + $0xf0] sm:$0xf] }
  0xfe   : > { %v1198_v15 = vpop.f32.mrf.mxu2  ;;  %v862_v17 = vpop.f32.mrf.mxu0 }
  0xff   : > { %v1367_v16 = vpop.f32.mrf.mxu3  ;;  %v1031_v19 = vpop.f32.mrf.mxu1 }
 0x100   : > { %v1368_v18 = vadd.f32 %v1367_v16, %v1198_v15  ;;  %v1032_v20 = vadd.f32 %v1031_v19, %v862_v17  ;;  %v2830_v16 = vor.u32 %v3129_v12, %v2829_v11  ;;  %v2834_v19 = vor.u32 %v3128_v13, %v2831_v14 }
 0x102   : > { %2201 = vxpose.xlu1.b32.cont [7/16] %v1368_v18, 128 }
 0x103   : > { %2170 = vxpose.xlu0.b32.cont [8/16] %v1032_v20, 128 }
 0x106   : > { %v1200_v25 = vpop.f32.mrf.mxu2  ;;  %v865_v28 = vpop.f32.mrf.mxu0 }
 0x107   : > { %v1369_v27 = vpop.f32.mrf.mxu3  ;;  %v1034_v30 = vpop.f32.mrf.mxu1 }
 0x108   : > { %v1370_v31 = vadd.f32 %v1369_v27, %v1200_v25  ;;  %v1035_v32 = vadd.f32 %v1034_v30, %v865_v28  ;;  %v3131_v30 = vld [vmem:[%s3537_s8 + $0x104] sm:$0xf0] }
 0x109   : > { %904 = vmatmul.bf16.gmra.mxu0 %v2806_v26 }
 0x10a   : > { %2202 = vxpose.xlu1.b32.cont [8/16] %v1370_v31, 128  ;;  %1073 = vmatmul.bf16.gmra.mxu1 %v2810_v29  ;;  %v3130_v31 = vld [vmem:[%s3537_s8 + $0x104] sm:$0xf] }
 0x10b   : > { %1242 = vmatmul.bf16.gmra.mxu2 %v2806_v26  ;;  %2171 = vxpose.xlu0.b32.cont [9/16] %v1035_v32, 128  ;;  %v2839_v32 = vld [vmem:[%s3537_s8 + $0x108] sm:$0xf0] }
 0x10c   : > { %1411 = vmatmul.bf16.gmra.mxu3 %v2810_v29  ;;  %v2837_v29 = vld [vmem:[%s3537_s8 + $0x100] sm:$0xf] }
 0x10e   : > { %v1203_v33 = vpop.f32.mrf.mxu2  ;;  %v867_v35 = vpop.f32.mrf.mxu0 }
 0x10f   : > { %v1372_v34 = vpop.f32.mrf.mxu3  ;;  %v1036_v37 = vpop.f32.mrf.mxu1 }
 0x110   : > { %v1373_v36 = vadd.f32 %v1372_v34, %v1203_v33  ;;  %v1037_v38 = vadd.f32 %v1036_v37, %v867_v35  ;;  %v2838_v34 = vor.u32 %v3131_v30, %v2837_v29  ;;  %v2842_v37 = vor.u32 %v3130_v31, %v2839_v32 }
 0x112   : > { %2203 = vxpose.xlu1.b32.cont [9/16] %v1373_v36, 128 }
 0x113   : > { %2172 = vxpose.xlu0.b32.cont [10/16] %v1037_v38, 128 }
 0x116   : > { %v1205_v43 = vpop.f32.mrf.mxu2  ;;  %v870_v46 = vpop.f32.mrf.mxu0 }
 0x117   : > { %v1374_v45 = vpop.f32.mrf.mxu3  ;;  %v1039_v48 = vpop.f32.mrf.mxu1 }
 0x118   : > { %v1375_v49 = vadd.f32 %v1374_v45, %v1205_v43  ;;  %v1040_v50 = vadd.f32 %v1039_v48, %v870_v46  ;;  %v3133_v48 = vld [vmem:[%s3537_s8 + $0x114] sm:$0xf0] }
 0x119   : > { %909 = vmatmul.bf16.gmra.mxu0 %v2814_v44 }
 0x11a   : > { %2204 = vxpose.xlu1.b32.cont [10/16] %v1375_v49, 128  ;;  %1078 = vmatmul.bf16.gmra.mxu1 %v2818_v47  ;;  %v3132_v49 = vld [vmem:[%s3537_s8 + $0x114] sm:$0xf] }
 0x11b   : > { %1247 = vmatmul.bf16.gmra.mxu2 %v2814_v44  ;;  %2173 = vxpose.xlu0.b32.cont [11/16] %v1040_v50, 128  ;;  %v2847_v50 = vld [vmem:[%s3537_s8 + $0x118] sm:$0xf0] }
 0x11c   : > { %1416 = vmatmul.bf16.gmra.mxu3 %v2818_v47  ;;  %v2845_v47 = vld [vmem:[%s3537_s8 + $0x110] sm:$0xf] }
 0x11e   : > { %v1208_v51 = vpop.f32.mrf.mxu2  ;;  %v872_v53 = vpop.f32.mrf.mxu0 }
 0x11f   : > { %v1377_v52 = vpop.f32.mrf.mxu3  ;;  %v1041_v55 = vpop.f32.mrf.mxu1 }
 0x120   : > { %v1378_v54 = vadd.f32 %v1377_v52, %v1208_v51  ;;  %v1042_v56 = vadd.f32 %v1041_v55, %v872_v53  ;;  %v2846_v52 = vor.u32 %v3133_v48, %v2845_v47  ;;  %v2850_v55 = vor.u32 %v3132_v49, %v2847_v50 }
 0x122   : > { %2205 = vxpose.xlu1.b32.cont [11/16] %v1378_v54, 128 }
 0x123   : > { %2174 = vxpose.xlu0.b32.cont [12/16] %v1042_v56, 128 }
 0x126   : > { %v1210_v61 = vpop.f32.mrf.mxu2  ;;  %v875_v0 = vpop.f32.mrf.mxu0 }
 0x127   : > { %v1379_v63 = vpop.f32.mrf.mxu3  ;;  %v1044_v2 = vpop.f32.mrf.mxu1 }
 0x128   : > { %v1380_v3 = vadd.f32 %v1379_v63, %v1210_v61  ;;  %v1045_v4 = vadd.f32 %v1044_v2, %v875_v0  ;;  %v3135_v2 = vld [vmem:[%s3537_s8 + $0x124] sm:$0xf0] }
 0x129   : > { %914 = vmatmul.bf16.gmra.mxu0 %v2822_v62 }
 0x12a   : > { %2206 = vxpose.xlu1.b32.cont [12/16] %v1380_v3, 128  ;;  %1083 = vmatmul.bf16.gmra.mxu1 %v2826_v1  ;;  %v3134_v3 = vld [vmem:[%s3537_s8 + $0x124] sm:$0xf] }
 0x12b   : > { %1252 = vmatmul.bf16.gmra.mxu2 %v2822_v62  ;;  %2175 = vxpose.xlu0.b32.cont [13/16] %v1045_v4, 128  ;;  %v2855_v4 = vld [vmem:[%s3537_s8 + $0x128] sm:$0xf0] }
 0x12c   : > { %1421 = vmatmul.bf16.gmra.mxu3 %v2826_v1  ;;  %v2853_v1 = vld [vmem:[%s3537_s8 + $0x120] sm:$0xf] }
 0x12e   : > { %v1213_v5 = vpop.f32.mrf.mxu2  ;;  %v877_v7 = vpop.f32.mrf.mxu0 }
 0x12f   : > { %v1382_v6 = vpop.f32.mrf.mxu3  ;;  %v1046_v9 = vpop.f32.mrf.mxu1 }
 0x130   : > { %v1383_v8 = vadd.f32 %v1382_v6, %v1213_v5  ;;  %v1047_v10 = vadd.f32 %v1046_v9, %v877_v7  ;;  %v2854_v6 = vor.u32 %v3135_v2, %v2853_v1  ;;  %v2858_v9 = vor.u32 %v3134_v3, %v2855_v4 }
 0x132   : > { %2207 = vxpose.xlu1.b32.cont [13/16] %v1383_v8, 128 }
 0x133   : > { %2176 = vxpose.xlu0.b32.cont [14/16] %v1047_v10, 128 }
 0x136   : > { %v1215_v15 = vpop.f32.mrf.mxu2  ;;  %v880_v18 = vpop.f32.mrf.mxu0 }
 0x137   : > { %v1384_v17 = vpop.f32.mrf.mxu3  ;;  %v1049_v20 = vpop.f32.mrf.mxu1 }
 0x138   : > { %v1385_v21 = vadd.f32 %v1384_v17, %v1215_v15  ;;  %v1050_v22 = vadd.f32 %v1049_v20, %v880_v18  ;;  %v3137_v20 = vld [vmem:[%s3537_s8 + $0x134] sm:$0xf0] }
 0x139   : > { %919 = vmatmul.bf16.gmra.mxu0 %v2830_v16 }
 0x13a   : > { %2208 = vxpose.xlu1.b32.cont [14/16] %v1385_v21, 128  ;;  %1088 = vmatmul.bf16.gmra.mxu1 %v2834_v19  ;;  %v3136_v21 = vld [vmem:[%s3537_s8 + $0x134] sm:$0xf] }
 0x13b   : > { %1257 = vmatmul.bf16.gmra.mxu2 %v2830_v16  ;;  %2177 = vxpose.xlu0.b32.cont [15/16] %v1050_v22, 128  ;;  %v2863_v22 = vld [vmem:[%s3537_s8 + $0x138] sm:$0xf0] }
 0x13c   : > { %1426 = vmatmul.bf16.gmra.mxu3 %v2834_v19  ;;  %v2861_v19 = vld [vmem:[%s3537_s8 + $0x130] sm:$0xf] }
 0x13e   : > { %v1218_v23 = vpop.f32.mrf.mxu2  ;;  %v882_v25 = vpop.f32.mrf.mxu0 }
 0x13f   : > { %v1387_v24 = vpop.f32.mrf.mxu3  ;;  %v1051_v27 = vpop.f32.mrf.mxu1 }
 0x140   : > { %v1388_v26 = vadd.f32 %v1387_v24, %v1218_v23  ;;  %v1052_v28 = vadd.f32 %v1051_v27, %v882_v25  ;;  %v2862_v24 = vor.u32 %v3137_v20, %v2861_v19  ;;  %v2866_v27 = vor.u32 %v3136_v21, %v2863_v22 }
 0x142   : > { %2209 = vxpose.xlu1.b32.cont [15/16] %v1388_v26, 128 }
 0x143   : > { %2178 = vxpose.xlu0.b32.end [16/16] %v1052_v28, 128 }
 0x146   : > { %v1220_v33 = vpop.f32.mrf.mxu2  ;;  %v885_v36 = vpop.f32.mrf.mxu0 }
 0x147   : > { %v1389_v35 = vpop.f32.mrf.mxu3  ;;  %v1054_v38 = vpop.f32.mrf.mxu1 }
 0x148   : > { %v1390_v39 = vadd.f32 %v1389_v35, %v1220_v33  ;;  %v1055_v40 = vadd.f32 %v1054_v38, %v885_v36  ;;  %v3139_v38 = vld [vmem:[%s3537_s8 + $0x144] sm:$0xf0] }
 0x149   : > { %924 = vmatmul.bf16.gmra.mxu0 %v2838_v34 }
 0x14a   : > { %2210 = vxpose.xlu1.b32.end [16/16] %v1390_v39, 128  ;;  %1093 = vmatmul.bf16.gmra.mxu1 %v2842_v37  ;;  %v3138_v39 = vld [vmem:[%s3537_s8 + $0x144] sm:$0xf] }
 0x14b   : > { %1262 = vmatmul.bf16.gmra.mxu2 %v2838_v34  ;;  %2227 = vxpose.xlu2.b32.start [1/16] %v1055_v40, 128  ;;  %v2871_v40 = vld [vmem:[%s3537_s8 + $0x148] sm:$0xf0] }
 0x14c   : > { %1431 = vmatmul.bf16.gmra.mxu3 %v2842_v37  ;;  %v2869_v37 = vld [vmem:[%s3537_s8 + $0x140] sm:$0xf] }
 0x14e   : > { %v1223_v41 = vpop.f32.mrf.mxu2  ;;  %v887_v43 = vpop.f32.mrf.mxu0 }
 0x14f   : > { %v1392_v42 = vpop.f32.mrf.mxu3  ;;  %v1056_v45 = vpop.f32.mrf.mxu1 }
 0x150   : > { %v1393_v44 = vadd.f32 %v1392_v42, %v1223_v41  ;;  %v1057_v46 = vadd.f32 %v1056_v45, %v887_v43  ;;  %v2870_v42 = vor.u32 %v3139_v38, %v2869_v37  ;;  %v2874_v45 = vor.u32 %v3138_v39, %v2871_v40 }
 0x152   : > { %2259 = vxpose.xlu0.b32.start [1/16] %v1393_v44, 128 }
 0x153   : > { %2228 = vxpose.xlu2.b32.cont [2/16] %v1057_v46, 128 }
 0x156   : > { %v1225_v51 = vpop.f32.mrf.mxu2  ;;  %v890_v54 = vpop.f32.mrf.mxu0 }
 0x157   : > { %v1394_v53 = vpop.f32.mrf.mxu3  ;;  %v1059_v57 = vpop.f32.mrf.mxu1 }
 0x158   : > { %v1395_v56 = vadd.f32 %v1394_v53, %v1225_v51  ;;  %v1060_v58 = vadd.f32 %v1059_v57, %v890_v54  ;;  %v3140_v57 = vld [vmem:[%s3537_s8 + $0x154] sm:$0xf] }
 0x159   : > { %929 = vmatmul.bf16.gmra.mxu0 %v2846_v52 }
 0x15a   : > { %2260 = vxpose.xlu0.b32.cont [2/16] %v1395_v56, 128  ;;  %1098 = vmatmul.bf16.gmra.mxu1 %v2850_v55  ;;  %v3141_v56 = vld [vmem:[%s3537_s8 + $0x154] sm:$0xf0] }
 0x15b   : > { %1267 = vmatmul.bf16.gmra.mxu2 %v2846_v52  ;;  %2229 = vxpose.xlu2.b32.cont [3/16] %v1060_v58, 128  ;;  %v2879_v58 = vld [vmem:[%s3537_s8 + $0x158] sm:$0xf0] }
 0x15c   : > { %1436 = vmatmul.bf16.gmra.mxu3 %v2850_v55  ;;  %v2877_v55 = vld [vmem:[%s3537_s8 + $0x150] sm:$0xf] }
 0x15e   : > { %v1228_v59 = vpop.f32.mrf.mxu2  ;;  %v892_v61 = vpop.f32.mrf.mxu0 }
 0x15f   : > { %v1397_v60 = vpop.f32.mrf.mxu3  ;;  %v1061_v63 = vpop.f32.mrf.mxu1 }
 0x160   : > { %v1398_v62 = vadd.f32 %v1397_v60, %v1228_v59  ;;  %v1062_v0 = vadd.f32 %v1061_v63, %v892_v61  ;;  %v2878_v60 = vor.u32 %v3141_v56, %v2877_v55  ;;  %v2882_v63 = vor.u32 %v3140_v57, %v2879_v58 }
 0x162   : > { %2261 = vxpose.xlu0.b32.cont [3/16] %v1398_v62, 128 }
 0x163   : > { %2230 = vxpose.xlu2.b32.cont [4/16] %v1062_v0, 128 }
 0x166   : > { %v1230_v5 = vpop.f32.mrf.mxu2  ;;  %v895_v8 = vpop.f32.mrf.mxu0 }
 0x167   : > { %v1399_v7 = vpop.f32.mrf.mxu3  ;;  %v1064_v11 = vpop.f32.mrf.mxu1 }
 0x168   : > { %v1400_v10 = vadd.f32 %v1399_v7, %v1230_v5  ;;  %v1065_v12 = vadd.f32 %v1064_v11, %v895_v8  ;;  %v3142_v11 = vld [vmem:[%s3537_s8 + $0x164] sm:$0xf] }
 0x169   : > { %934 = vmatmul.bf16.gmra.mxu0 %v2854_v6 }
 0x16a   : > { %2262 = vxpose.xlu0.b32.cont [4/16] %v1400_v10, 128  ;;  %1103 = vmatmul.bf16.gmra.mxu1 %v2858_v9  ;;  %v3143_v10 = vld [vmem:[%s3537_s8 + $0x164] sm:$0xf0] }
 0x16b   : > { %1272 = vmatmul.bf16.gmra.mxu2 %v2854_v6  ;;  %2231 = vxpose.xlu2.b32.cont [5/16] %v1065_v12, 128  ;;  %v2887_v12 = vld [vmem:[%s3537_s8 + $0x168] sm:$0xf0] }
 0x16c   : > { %1441 = vmatmul.bf16.gmra.mxu3 %v2858_v9  ;;  %v2885_v9 = vld [vmem:[%s3537_s8 + $0x160] sm:$0xf] }
 0x16e   : > { %v1233_v13 = vpop.f32.mrf.mxu2  ;;  %v897_v15 = vpop.f32.mrf.mxu0 }
 0x16f   : > { %v1402_v14 = vpop.f32.mrf.mxu3  ;;  %v1066_v17 = vpop.f32.mrf.mxu1 }
 0x170   : > { %v1403_v16 = vadd.f32 %v1402_v14, %v1233_v13  ;;  %v1067_v18 = vadd.f32 %v1066_v17, %v897_v15  ;;  %v2886_v14 = vor.u32 %v3143_v10, %v2885_v9  ;;  %v2890_v17 = vor.u32 %v3142_v11, %v2887_v12 }
 0x172   : > { %2263 = vxpose.xlu0.b32.cont [5/16] %v1403_v16, 128 }
 0x173   : > { %2232 = vxpose.xlu2.b32.cont [6/16] %v1067_v18, 128 }
 0x176   : > { %v1235_v23 = vpop.f32.mrf.mxu2  ;;  %v900_v26 = vpop.f32.mrf.mxu0 }
 0x177   : > { %v1404_v25 = vpop.f32.mrf.mxu3  ;;  %v1069_v29 = vpop.f32.mrf.mxu1 }
 0x178   : > { %v1405_v28 = vadd.f32 %v1404_v25, %v1235_v23  ;;  %v1070_v30 = vadd.f32 %v1069_v29, %v900_v26  ;;  %v3144_v29 = vld [vmem:[%s3537_s8 + $0x174] sm:$0xf] }
 0x179   : > { %939 = vmatmul.bf16.gmra.mxu0 %v2862_v24 }
 0x17a   : > { %2264 = vxpose.xlu0.b32.cont [6/16] %v1405_v28, 128  ;;  %1108 = vmatmul.bf16.gmra.mxu1 %v2866_v27  ;;  %v3145_v28 = vld [vmem:[%s3537_s8 + $0x174] sm:$0xf0] }
 0x17b   : > { %1277 = vmatmul.bf16.gmra.mxu2 %v2862_v24  ;;  %2233 = vxpose.xlu2.b32.cont [7/16] %v1070_v30, 128  ;;  %v2895_v30 = vld [vmem:[%s3537_s8 + $0x178] sm:$0xf0] }
 0x17c   : > { %1446 = vmatmul.bf16.gmra.mxu3 %v2866_v27  ;;  %v2893_v27 = vld [vmem:[%s3537_s8 + $0x170] sm:$0xf] }
 0x17e   : > { %v1238_v31 = vpop.f32.mrf.mxu2  ;;  %v902_v33 = vpop.f32.mrf.mxu0 }
 0x17f   : > { %v1407_v32 = vpop.f32.mrf.mxu3  ;;  %v1071_v35 = vpop.f32.mrf.mxu1 }
 0x180   : > { %v1408_v34 = vadd.f32 %v1407_v32, %v1238_v31  ;;  %v1072_v36 = vadd.f32 %v1071_v35, %v902_v33  ;;  %v2894_v32 = vor.u32 %v3145_v28, %v2893_v27  ;;  %v2898_v35 = vor.u32 %v3144_v29, %v2895_v30 }
 0x182   : > { %2265 = vxpose.xlu0.b32.cont [7/16] %v1408_v34, 128 }
 0x183   : > { %2234 = vxpose.xlu2.b32.cont [8/16] %v1072_v36, 128 }
 0x186   : > { %v1240_v41 = vpop.f32.mrf.mxu2  ;;  %v905_v44 = vpop.f32.mrf.mxu0 }
 0x187   : > { %v1409_v43 = vpop.f32.mrf.mxu3  ;;  %v1074_v47 = vpop.f32.mrf.mxu1 }
 0x188   : > { %v1410_v46 = vadd.f32 %v1409_v43, %v1240_v41  ;;  %v1075_v48 = vadd.f32 %v1074_v47, %v905_v44  ;;  %v3146_v47 = vld [vmem:[%s3537_s8 + $0x184] sm:$0xf] }
 0x189   : > { %944 = vmatmul.bf16.gmra.mxu0 %v2870_v42 }
 0x18a   : > { %2266 = vxpose.xlu0.b32.cont [8/16] %v1410_v46, 128  ;;  %1113 = vmatmul.bf16.gmra.mxu1 %v2874_v45  ;;  %v3147_v46 = vld [vmem:[%s3537_s8 + $0x184] sm:$0xf0] }
 0x18b   : > { %1282 = vmatmul.bf16.gmra.mxu2 %v2870_v42  ;;  %2235 = vxpose.xlu2.b32.cont [9/16] %v1075_v48, 128  ;;  %v2903_v48 = vld [vmem:[%s3537_s8 + $0x188] sm:$0xf0] }
 0x18c   : > { %1451 = vmatmul.bf16.gmra.mxu3 %v2874_v45  ;;  %v2901_v45 = vld [vmem:[%s3537_s8 + $0x180] sm:$0xf] }
 0x18e   : > { %v1243_v49 = vpop.f32.mrf.mxu2  ;;  %v907_v51 = vpop.f32.mrf.mxu0 }
 0x18f   : > { %v1412_v50 = vpop.f32.mrf.mxu3  ;;  %v1076_v53 = vpop.f32.mrf.mxu1 }
 0x190   : > { %v1413_v52 = vadd.f32 %v1412_v50, %v1243_v49  ;;  %v1077_v54 = vadd.f32 %v1076_v53, %v907_v51  ;;  %v2902_v50 = vor.u32 %v3147_v46, %v2901_v45  ;;  %v2906_v53 = vor.u32 %v3146_v47, %v2903_v48  ;;  %v3152_v45 = vld [vmem:[%s3537_s8 + $0x1b4] sm:$0xf]  ;;  %v2927_v46 = vld [vmem:[%s3537_s8 + $0x1b8] sm:$0xf0] }
 0x192   : > { %2267 = vxpose.xlu0.b32.cont [9/16] %v1413_v52, 128 }
 0x193   : > { %2236 = vxpose.xlu2.b32.cont [10/16] %v1077_v54, 128 }
 0x196   : > { %v1245_v59 = vpop.f32.mrf.mxu2  ;;  %v910_v62 = vpop.f32.mrf.mxu0 }
 0x197   : > { %v1414_v61 = vpop.f32.mrf.mxu3  ;;  %v1079_v1 = vpop.f32.mrf.mxu1 }
 0x198   : > { %v1415_v0 = vadd.f32 %v1414_v61, %v1245_v59  ;;  %v1080_v2 = vadd.f32 %v1079_v1, %v910_v62  ;;  %v3148_v1 = vld [vmem:[%s3537_s8 + $0x194] sm:$0xf] }
 0x199   : > { %949 = vmatmul.bf16.gmra.mxu0 %v2878_v60 }
 0x19a   : > { %2268 = vxpose.xlu0.b32.cont [10/16] %v1415_v0, 128  ;;  %1118 = vmatmul.bf16.gmra.mxu1 %v2882_v63  ;;  %v3149_v0 = vld [vmem:[%s3537_s8 + $0x194] sm:$0xf0] }
 0x19b   : > { %1287 = vmatmul.bf16.gmra.mxu2 %v2878_v60  ;;  %2237 = vxpose.xlu2.b32.cont [11/16] %v1080_v2, 128  ;;  %v2911_v2 = vld [vmem:[%s3537_s8 + $0x198] sm:$0xf0] }
 0x19c   : > { %1456 = vmatmul.bf16.gmra.mxu3 %v2882_v63  ;;  %v2909_v63 = vld [vmem:[%s3537_s8 + $0x190] sm:$0xf]  ;;  %v2914_v9 = vor.u32 %v3148_v1, %v2911_v2  ;;  %v2933_v1 = vld [vmem:[%s3537_s8 + $0x1c0] sm:$0xf]  ;;  %v3155_v2 = vld [vmem:[%s3537_s8 + $0x1c4] sm:$0xf0] }
 0x19e   : > { %v1248_v3 = vpop.f32.mrf.mxu2  ;;  %v912_v5 = vpop.f32.mrf.mxu0 }
 0x19f   : > { %v1417_v4 = vpop.f32.mrf.mxu3  ;;  %v1081_v7 = vpop.f32.mrf.mxu1 }
 0x1a0   : > { %v1418_v6 = vadd.f32 %v1417_v4, %v1248_v3  ;;  %v1082_v8 = vadd.f32 %v1081_v7, %v912_v5  ;;  %v2211_v3 = vpop.trf.xlu1  ;;  %v2179_v4 = vpop.trf.xlu0 }
 0x1a1   : > { %2483 = vst [vmem:[%s3712_s15 + $0x200] sm:$0xff] %v2211_v3  ;;  %v3154_v3 = vld [vmem:[%s3537_s8 + $0x1c4] sm:$0xf] }
 0x1a2   : > { %2269 = vxpose.xlu0.b32.cont [11/16] %v1418_v6, 128  ;;  %v2910_v6 = vor.u32 %v3149_v0, %v2909_v63  ;;  %2419 = vst [vmem:[%s3712_s15] sm:$0xff] %v2179_v4  ;;  %v2935_v4 = vld [vmem:[%s3537_s8 + $0x1c8] sm:$0xf0] }
 0x1a3   : > { %2238 = vxpose.xlu2.b32.cont [12/16] %v1082_v8, 128 }
 0x1a6   : > { %v1250_v13 = vpop.f32.mrf.mxu2  ;;  %v915_v16 = vpop.f32.mrf.mxu0 }
 0x1a7   : > { %v1419_v15 = vpop.f32.mrf.mxu3  ;;  %v1084_v19 = vpop.f32.mrf.mxu1 }
 0x1a8   : > { %v1420_v18 = vadd.f32 %v1419_v15, %v1250_v13  ;;  %v1085_v20 = vadd.f32 %v1084_v19, %v915_v16  ;;  %v2212_v13 = vpop.trf.xlu1 }
 0x1a9   : > { %954 = vmatmul.bf16.gmra.mxu0 %v2886_v14  ;;  %2487 = vst [vmem:[%s3712_s15 + $0x220] sm:$0xff] %v2212_v13 }
 0x1aa   : > { %2270 = vxpose.xlu0.b32.cont [12/16] %v1420_v18, 128  ;;  %1123 = vmatmul.bf16.gmra.mxu1 %v2890_v17 }
 0x1ab   : > { %1292 = vmatmul.bf16.gmra.mxu2 %v2886_v14  ;;  %2239 = vxpose.xlu2.b32.cont [13/16] %v1085_v20, 128  ;;  %v2180_v14 = vpop.trf.xlu0 }
 0x1ac   : > { %1461 = vmatmul.bf16.gmra.mxu3 %v2890_v17  ;;  %2423 = vst [vmem:[%s3712_s15 + $0x20] sm:$0xff] %v2180_v14 }
 0x1ae   : > { %v1253_v21 = vpop.f32.mrf.mxu2  ;;  %v917_v23 = vpop.f32.mrf.mxu0 }
 0x1af   : > { %v1422_v22 = vpop.f32.mrf.mxu3  ;;  %v1086_v25 = vpop.f32.mrf.mxu1 }
 0x1b0   : > { %v1423_v24 = vadd.f32 %v1422_v22, %v1253_v21  ;;  %v1087_v26 = vadd.f32 %v1086_v25, %v917_v23  ;;  %v2917_v21 = vld [vmem:[%s3537_s8 + $0x1a0] sm:$0xf]  ;;  %v3151_v22 = vld [vmem:[%s3537_s8 + $0x1a4] sm:$0xf0]  ;;  %v3150_v23 = vld [vmem:[%s3537_s8 + $0x1a4] sm:$0xf]  ;;  %v2213_v25 = vpop.trf.xlu1 }
 0x1b1   : > { %2491 = vst [vmem:[%s3712_s15 + $0x240] sm:$0xff] %v2213_v25  ;;  %v2918_v28 = vor.u32 %v3151_v22, %v2917_v21  ;;  %v3156_v25 = vld [vmem:[%s3537_s8 + $0x1d4] sm:$0xf] }
 0x1b2   : > { %2271 = vxpose.xlu0.b32.cont [13/16] %v1423_v24, 128  ;;  %v2919_v24 = vld [vmem:[%s3537_s8 + $0x1a8] sm:$0xf0] }
 0x1b3   : > { %2240 = vxpose.xlu2.b32.cont [14/16] %v1087_v26, 128  ;;  %v2181_v26 = vpop.trf.xlu0 }
 0x1b4   : > { %2427 = vst [vmem:[%s3712_s15 + $0x40] sm:$0xff] %v2181_v26  ;;  %v2943_v26 = vld [vmem:[%s3537_s8 + $0x1d8] sm:$0xf0] }
 0x1b6   : > { %v1255_v31 = vpop.f32.mrf.mxu2  ;;  %v920_v34 = vpop.f32.mrf.mxu0 }
 0x1b7   : > { %v1424_v33 = vpop.f32.mrf.mxu3  ;;  %v1089_v37 = vpop.f32.mrf.mxu1 }
 0x1b8   : > { %v1425_v36 = vadd.f32 %v1424_v33, %v1255_v31  ;;  %v1090_v38 = vadd.f32 %v1089_v37, %v920_v34  ;;  %v2922_v31 = vor.u32 %v3150_v23, %v2919_v24  ;;  %v2941_v23 = vld [vmem:[%s3537_s8 + $0x1d0] sm:$0xf]  ;;  %v3157_v24 = vld [vmem:[%s3537_s8 + $0x1d4] sm:$0xf0] }
 0x1b9   : > { %959 = vmatmul.bf16.gmra.mxu0 %v2894_v32 }
 0x1ba   : > { %2272 = vxpose.xlu0.b32.cont [14/16] %v1425_v36, 128  ;;  %1128 = vmatmul.bf16.gmra.mxu1 %v2898_v35 }
 0x1bb   : > { %1297 = vmatmul.bf16.gmra.mxu2 %v2894_v32  ;;  %2241 = vxpose.xlu2.b32.cont [15/16] %v1090_v38, 128  ;;  %v2182_v36 = vpop.trf.xlu0 }
 0x1bc   : > { %1466 = vmatmul.bf16.gmra.mxu3 %v2898_v35  ;;  %v2214_v35 = vpop.trf.xlu1  ;;  %2431 = vst [vmem:[%s3712_s15 + $0x60] sm:$0xff] %v2182_v36 }
 0x1bd   : > { %2495 = vst [vmem:[%s3712_s15 + $0x260] sm:$0xff] %v2214_v35 }
 0x1be   : > { %v1258_v39 = vpop.f32.mrf.mxu2  ;;  %v922_v41 = vpop.f32.mrf.mxu0 }
 0x1bf   : > { %v1427_v40 = vpop.f32.mrf.mxu3  ;;  %v1091_v43 = vpop.f32.mrf.mxu1 }
 0x1c0   : > { %v1428_v42 = vadd.f32 %v1427_v40, %v1258_v39  ;;  %v1092_v44 = vadd.f32 %v1091_v43, %v922_v41  ;;  %v2925_v43 = vld [vmem:[%s3537_s8 + $0x1b0] sm:$0xf] }
 0x1c2   : > { %2273 = vxpose.xlu0.b32.cont [15/16] %v1428_v42, 128 }
 0x1c3   : > { %2242 = vxpose.xlu2.b32.end [16/16] %v1092_v44, 128  ;;  %v3153_v44 = vld [vmem:[%s3537_s8 + $0x1b4] sm:$0xf0]  ;;  %v2183_v48 = vpop.trf.xlu0 }
 0x1c4   : > { %v2215_v47 = vpop.trf.xlu1  ;;  %2435 = vst [vmem:[%s3712_s15 + $0x80] sm:$0xff] %v2183_v48  ;;  %v2951_v48 = vld [vmem:[%s3537_s8 + $0x1e8] sm:$0xf0] }
 0x1c5   : > { %2499 = vst [vmem:[%s3712_s15 + $0x280] sm:$0xff] %v2215_v47  ;;  %v3158_v47 = vld [vmem:[%s3537_s8 + $0x1e4] sm:$0xf] }
 0x1c6   : > { %v1260_v49 = vpop.f32.mrf.mxu2  ;;  %v925_v52 = vpop.f32.mrf.mxu0 }
 0x1c7   : > { %v1429_v51 = vpop.f32.mrf.mxu3  ;;  %v1094_v55 = vpop.f32.mrf.mxu1 }
 0x1c8   : > { %v1430_v54 = vadd.f32 %v1429_v51, %v1260_v49  ;;  %v1095_v56 = vadd.f32 %v1094_v55, %v925_v52 }
 0x1c9   : > { %964 = vmatmul.bf16.gmra.mxu0 %v2902_v50 }
 0x1ca   : > { %2274 = vxpose.xlu0.b32.end [16/16] %v1430_v54, 128  ;;  %1133 = vmatmul.bf16.gmra.mxu1 %v2906_v53 }
 0x1cb   : > { %1302 = vmatmul.bf16.gmra.mxu2 %v2902_v50  ;;  %2291 = vxpose.xlu1.b32.start [1/16] %v1095_v56, 128  ;;  %v2926_v50 = vor.u32 %v3153_v44, %v2925_v43 }
 0x1cc   : > { %1471 = vmatmul.bf16.gmra.mxu3 %v2906_v53  ;;  %v2930_v53 = vor.u32 %v3152_v45, %v2927_v46  ;;  %v2949_v45 = vld [vmem:[%s3537_s8 + $0x1e0] sm:$0xf]  ;;  %v3159_v46 = vld [vmem:[%s3537_s8 + $0x1e4] sm:$0xf0] }
 0x1ce   : > { %v1263_v57 = vpop.f32.mrf.mxu2  ;;  %v927_v59 = vpop.f32.mrf.mxu0 }
 0x1cf   : > { %v1432_v58 = vpop.f32.mrf.mxu3  ;;  %v1096_v61 = vpop.f32.mrf.mxu1 }
 0x1d0   : > { %v1433_v60 = vadd.f32 %v1432_v58, %v1263_v57  ;;  %v1097_v62 = vadd.f32 %v1096_v61, %v927_v59  ;;  %v2216_v57 = vpop.trf.xlu1  ;;  %v2184_v58 = vpop.trf.xlu0 }
 0x1d1   : > { %2503 = vst [vmem:[%s3712_s15 + $0x2a0] sm:$0xff] %v2216_v57 }
 0x1d2   : > { %2323 = vxpose.xlu2.b32.start [1/16] %v1433_v60, 128  ;;  %2439 = vst [vmem:[%s3712_s15 + $0xa0] sm:$0xff] %v2184_v58 }
 0x1d3   : > { %2292 = vxpose.xlu1.b32.cont [2/16] %v1097_v62, 128 }
 0x1d6   : > { %v1265_v5 = vpop.f32.mrf.mxu2  ;;  %v930_v8 = vpop.f32.mrf.mxu0 }
 0x1d7   : > { %v1434_v7 = vpop.f32.mrf.mxu3  ;;  %v1099_v11 = vpop.f32.mrf.mxu1 }
 0x1d8   : > { %v1435_v10 = vadd.f32 %v1434_v7, %v1265_v5  ;;  %v1100_v12 = vadd.f32 %v1099_v11, %v930_v8  ;;  %v2217_v5 = vpop.trf.xlu1  ;;  %v2934_v8 = vor.u32 %v3155_v2, %v2933_v1  ;;  %v2938_v11 = vor.u32 %v3154_v3, %v2935_v4  ;;  %v2957_v3 = vld [vmem:[%s3537_s8 + $0x1f0] sm:$0xf]  ;;  %v3161_v4 = vld [vmem:[%s3537_s8 + $0x1f4] sm:$0xf0] }
 0x1d9   : > { %969 = vmatmul.bf16.gmra.mxu0 %v2910_v6  ;;  %2507 = vst [vmem:[%s3712_s15 + $0x2c0] sm:$0xff] %v2217_v5  ;;  %v3160_v5 = vld [vmem:[%s3537_s8 + $0x1f4] sm:$0xf] }
 0x1da   : > { %2324 = vxpose.xlu2.b32.cont [2/16] %v1435_v10, 128  ;;  %1138 = vmatmul.bf16.gmra.mxu1 %v2914_v9 }
 0x1db   : > { %1307 = vmatmul.bf16.gmra.mxu2 %v2910_v6  ;;  %2293 = vxpose.xlu1.b32.cont [3/16] %v1100_v12, 128  ;;  %v2185_v6 = vpop.trf.xlu0 }
 0x1dc   : > { %1476 = vmatmul.bf16.gmra.mxu3 %v2914_v9  ;;  %2443 = vst [vmem:[%s3712_s15 + $0xc0] sm:$0xff] %v2185_v6  ;;  %v2959_v6 = vld [vmem:[%s3537_s8 + $0x1f8] sm:$0xf0] }
 0x1de   : > { %v1268_v15 = vpop.f32.mrf.mxu2  ;;  %v932_v17 = vpop.f32.mrf.mxu0 }
 0x1df   : > { %v1437_v16 = vpop.f32.mrf.mxu3  ;;  %v1101_v19 = vpop.f32.mrf.mxu1 }
 0x1e0   : > { %v1438_v18 = vadd.f32 %v1437_v16, %v1268_v15  ;;  %v1102_v20 = vadd.f32 %v1101_v19, %v932_v17  ;;  %v2218_v15 = vpop.trf.xlu1 }
 0x1e1   : > { %2511 = vst [vmem:[%s3712_s15 + $0x2e0] sm:$0xff] %v2218_v15 }
 0x1e2   : > { %2325 = vxpose.xlu2.b32.cont [3/16] %v1438_v18, 128 }
 0x1e3   : > { %2294 = vxpose.xlu1.b32.cont [4/16] %v1102_v20, 128  ;;  %v2186_v16 = vpop.trf.xlu0 }
 0x1e4   : > { %2447 = vst [vmem:[%s3712_s15 + $0xe0] sm:$0xff] %v2186_v16 }
 0x1e6   : > { %v1270_v27 = vpop.f32.mrf.mxu2  ;;  %v935_v30 = vpop.f32.mrf.mxu0 }
 0x1e7   : > { %v1439_v29 = vpop.f32.mrf.mxu3  ;;  %v1104_v33 = vpop.f32.mrf.mxu1 }
 0x1e8   : > { %v1440_v32 = vadd.f32 %v1439_v29, %v1270_v27  ;;  %v1105_v34 = vadd.f32 %v1104_v33, %v935_v30  ;;  %v2219_v27 = vpop.trf.xlu1  ;;  %v2942_v30 = vor.u32 %v3157_v24, %v2941_v23  ;;  %v2946_v33 = vor.u32 %v3156_v25, %v2943_v26 }
 0x1e9   : > { %974 = vmatmul.bf16.gmra.mxu0 %v2918_v28  ;;  %2515 = vst [vmem:[%s3712_s15 + $0x300] sm:$0xff] %v2219_v27 }
 0x1ea   : > { %2326 = vxpose.xlu2.b32.cont [4/16] %v1440_v32, 128  ;;  %1143 = vmatmul.bf16.gmra.mxu1 %v2922_v31 }
 0x1eb   : > { %1312 = vmatmul.bf16.gmra.mxu2 %v2918_v28  ;;  %2295 = vxpose.xlu1.b32.cont [5/16] %v1105_v34, 128  ;;  %v2187_v28 = vpop.trf.xlu0 }
 0x1ec   : > { %1481 = vmatmul.bf16.gmra.mxu3 %v2922_v31  ;;  %2451 = vst [vmem:[%s3712_s15 + $0x100] sm:$0xff] %v2187_v28 }
 0x1ee   : > { %v1273_v37 = vpop.f32.mrf.mxu2  ;;  %v937_v39 = vpop.f32.mrf.mxu0 }
 0x1ef   : > { %v1442_v38 = vpop.f32.mrf.mxu3  ;;  %v1106_v41 = vpop.f32.mrf.mxu1 }
 0x1f0   : > { %v1443_v40 = vadd.f32 %v1442_v38, %v1273_v37  ;;  %v1107_v42 = vadd.f32 %v1106_v41, %v937_v39  ;;  %v2220_v37 = vpop.trf.xlu1 }
 0x1f1   : > { %2519 = vst [vmem:[%s3712_s15 + $0x320] sm:$0xff] %v2220_v37 }
 0x1f2   : > { %2327 = vxpose.xlu2.b32.cont [5/16] %v1443_v40, 128 }
 0x1f3   : > { %2296 = vxpose.xlu1.b32.cont [6/16] %v1107_v42, 128  ;;  %v2188_v38 = vpop.trf.xlu0 }
 0x1f4   : > { %2455 = vst [vmem:[%s3712_s15 + $0x120] sm:$0xff] %v2188_v38 }
 0x1f6   : > { %v1275_v49 = vpop.f32.mrf.mxu2  ;;  %v940_v52 = vpop.f32.mrf.mxu0 }
 0x1f7   : > { %v1444_v51 = vpop.f32.mrf.mxu3  ;;  %v1109_v55 = vpop.f32.mrf.mxu1 }
 0x1f8   : > { %v1445_v54 = vadd.f32 %v1444_v51, %v1275_v49  ;;  %v1110_v56 = vadd.f32 %v1109_v55, %v940_v52  ;;  %v2221_v49 = vpop.trf.xlu1  ;;  %v2950_v52 = vor.u32 %v3159_v46, %v2949_v45  ;;  %v2954_v55 = vor.u32 %v3158_v47, %v2951_v48 }
 0x1f9   : > { %979 = vmatmul.bf16.gmra.mxu0 %v2926_v50  ;;  %2523 = vst [vmem:[%s3712_s15 + $0x340] sm:$0xff] %v2221_v49 }
 0x1fa   : > { %2328 = vxpose.xlu2.b32.cont [6/16] %v1445_v54, 128  ;;  %1148 = vmatmul.bf16.gmra.mxu1 %v2930_v53 }
 0x1fb   : > { %1317 = vmatmul.bf16.gmra.mxu2 %v2926_v50  ;;  %2297 = vxpose.xlu1.b32.cont [7/16] %v1110_v56, 128  ;;  %v2189_v50 = vpop.trf.xlu0 }
 0x1fc   : > { %1486 = vmatmul.bf16.gmra.mxu3 %v2930_v53  ;;  %2459 = vst [vmem:[%s3712_s15 + $0x140] sm:$0xff] %v2189_v50 }
 0x1fe   : > { %v1278_v59 = vpop.f32.mrf.mxu2  ;;  %v942_v61 = vpop.f32.mrf.mxu0 }
 0x1ff   : > { %v1447_v60 = vpop.f32.mrf.mxu3  ;;  %v1111_v63 = vpop.f32.mrf.mxu1 }
 0x200   : > { %v1448_v62 = vadd.f32 %v1447_v60, %v1278_v59  ;;  %v1112_v0 = vadd.f32 %v1111_v63, %v942_v61  ;;  %v2222_v59 = vpop.trf.xlu1 }
 0x201   : > { %2527 = vst [vmem:[%s3712_s15 + $0x360] sm:$0xff] %v2222_v59 }
 0x202   : > { %2329 = vxpose.xlu2.b32.cont [7/16] %v1448_v62, 128 }
 0x203   : > { %2298 = vxpose.xlu1.b32.cont [8/16] %v1112_v0, 128  ;;  %v2190_v60 = vpop.trf.xlu0 }
 0x204   : > { %2463 = vst [vmem:[%s3712_s15 + $0x160] sm:$0xff] %v2190_v60 }
 0x206   : > { %v1280_v7 = vpop.f32.mrf.mxu2  ;;  %v945_v10 = vpop.f32.mrf.mxu0 }
 0x207   : > { %v1449_v9 = vpop.f32.mrf.mxu3  ;;  %v1114_v13 = vpop.f32.mrf.mxu1 }
 0x208   : > { %v1450_v12 = vadd.f32 %v1449_v9, %v1280_v7  ;;  %v1115_v14 = vadd.f32 %v1114_v13, %v945_v10  ;;  %v2223_v7 = vpop.trf.xlu1  ;;  %v2958_v10 = vor.u32 %v3161_v4, %v2957_v3  ;;  %v2962_v13 = vor.u32 %v3160_v5, %v2959_v6 }
 0x209   : > { %984 = vmatmul.bf16.gmra.mxu0 %v2934_v8  ;;  %2531 = vst [vmem:[%s3712_s15 + $0x380] sm:$0xff] %v2223_v7 }
 0x20a   : > { %2330 = vxpose.xlu2.b32.cont [8/16] %v1450_v12, 128  ;;  %1153 = vmatmul.bf16.gmra.mxu1 %v2938_v11 }
 0x20b   : > { %1322 = vmatmul.bf16.gmra.mxu2 %v2934_v8  ;;  %2299 = vxpose.xlu1.b32.cont [9/16] %v1115_v14, 128  ;;  %v2191_v8 = vpop.trf.xlu0 }
 0x20c   : > { %1491 = vmatmul.bf16.gmra.mxu3 %v2938_v11  ;;  %2467 = vst [vmem:[%s3712_s15 + $0x180] sm:$0xff] %v2191_v8 }
 0x20e   : > { %v1283_v17 = vpop.f32.mrf.mxu2  ;;  %v947_v19 = vpop.f32.mrf.mxu0 }
 0x20f   : > { %v1452_v18 = vpop.f32.mrf.mxu3  ;;  %v1116_v21 = vpop.f32.mrf.mxu1 }
 0x210   : > { %v1453_v20 = vadd.f32 %v1452_v18, %v1283_v17  ;;  %v1117_v22 = vadd.f32 %v1116_v21, %v947_v19  ;;  %v2224_v17 = vpop.trf.xlu1 }
 0x211   : > { %2535 = vst [vmem:[%s3712_s15 + $0x3a0] sm:$0xff] %v2224_v17 }
 0x212   : > { %2331 = vxpose.xlu2.b32.cont [9/16] %v1453_v20, 128 }
 0x213   : > { %2300 = vxpose.xlu1.b32.cont [10/16] %v1117_v22, 128  ;;  %v2192_v18 = vpop.trf.xlu0 }
 0x214   : > { %2471 = vst [vmem:[%s3712_s15 + $0x1a0] sm:$0xff] %v2192_v18 }
 0x216   : > { %v1285_v29 = vpop.f32.mrf.mxu2  ;;  %v950_v32 = vpop.f32.mrf.mxu0 }
 0x217   : > { %v1454_v31 = vpop.f32.mrf.mxu3  ;;  %v1119_v35 = vpop.f32.mrf.mxu1 }
 0x218   : > { %v1455_v34 = vadd.f32 %v1454_v31, %v1285_v29  ;;  %v1120_v36 = vadd.f32 %v1119_v35, %v950_v32  ;;  %v2225_v25 = vpop.trf.xlu1 }
 0x219   : > { %989 = vmatmul.bf16.gmra.mxu0 %v2942_v30  ;;  %2539 = vst [vmem:[%s3712_s15 + $0x3c0] sm:$0xff] %v2225_v25 }
 0x21a   : > { %2332 = vxpose.xlu2.b32.cont [10/16] %v1455_v34, 128  ;;  %1158 = vmatmul.bf16.gmra.mxu1 %v2946_v33 }
 0x21b   : > { %1327 = vmatmul.bf16.gmra.mxu2 %v2942_v30  ;;  %2301 = vxpose.xlu1.b32.cont [11/16] %v1120_v36, 128  ;;  %v2193_v26 = vpop.trf.xlu0 }
 0x21c   : > { %1496 = vmatmul.bf16.gmra.mxu3 %v2946_v33  ;;  %2475 = vst [vmem:[%s3712_s15 + $0x1c0] sm:$0xff] %v2193_v26 }
 0x21e   : > { %v1288_v39 = vpop.f32.mrf.mxu2  ;;  %v952_v41 = vpop.f32.mrf.mxu0 }
 0x21f   : > { %v1457_v40 = vpop.f32.mrf.mxu3  ;;  %v1121_v43 = vpop.f32.mrf.mxu1 }
 0x220   : > { %v1458_v42 = vadd.f32 %v1457_v40, %v1288_v39  ;;  %v1122_v44 = vadd.f32 %v1121_v43, %v952_v41  ;;  %v2226_v33 = vpop.trf.xlu1  ;;  %v2243_v41 = vpop.trf.xlu2 }
 0x221   : > { %2543 = vst [vmem:[%s3712_s15 + $0x3e0] sm:$0xff] %v2226_v33 }
 0x222   : > { %2333 = vxpose.xlu2.b32.cont [11/16] %v1458_v42, 128  ;;  %2420 = vst [vmem:[%s3712_s15 + $0x8] sm:$0xff] %v2243_v41 }
 0x223   : > { %2302 = vxpose.xlu1.b32.cont [12/16] %v1122_v44, 128  ;;  %v2194_v34 = vpop.trf.xlu0 }
 0x224   : > { %2479 = vst [vmem:[%s3712_s15 + $0x1e0] sm:$0xff] %v2194_v34 }
 0x226   : > { %v1290_v51 = vpop.f32.mrf.mxu2  ;;  %v955_v54 = vpop.f32.mrf.mxu0 }
 0x227   : > { %v1459_v53 = vpop.f32.mrf.mxu3  ;;  %v1124_v57 = vpop.f32.mrf.mxu1 }
 0x228   : > { %v1460_v56 = vadd.f32 %v1459_v53, %v1290_v51  ;;  %v1125_v58 = vadd.f32 %v1124_v57, %v955_v54  ;;  %v2244_v49 = vpop.trf.xlu2 }
 0x229   : > { %994 = vmatmul.bf16.gmra.mxu0 %v2950_v52  ;;  %2424 = vst [vmem:[%s3712_s15 + $0x28] sm:$0xff] %v2244_v49 }
 0x22a   : > { %2334 = vxpose.xlu2.b32.cont [12/16] %v1460_v56, 128  ;;  %1163 = vmatmul.bf16.gmra.mxu1 %v2954_v55 }
 0x22b   : > { %1332 = vmatmul.bf16.gmra.mxu2 %v2950_v52  ;;  %2303 = vxpose.xlu1.b32.cont [13/16] %v1125_v58, 128  ;;  %v2275_v42 = vpop.trf.xlu0 }
 0x22c   : > { %1501 = vmatmul.bf16.gmra.mxu3 %v2954_v55  ;;  %2484 = vst [vmem:[%s3712_s15 + $0x208] sm:$0xff] %v2275_v42 }
 0x22e   : > { %v1293_v61 = vpop.f32.mrf.mxu2  ;;  %v957_v63 = vpop.f32.mrf.mxu0 }
 0x22f   : > { %v1462_v62 = vpop.f32.mrf.mxu3  ;;  %v1126_v1 = vpop.f32.mrf.mxu1 }
 0x230   : > { %v1463_v0 = vadd.f32 %v1462_v62, %v1293_v61  ;;  %v1127_v2 = vadd.f32 %v1126_v1, %v957_v63  ;;  %v2245_v57 = vpop.trf.xlu2 }
 0x231   : > { %2428 = vst [vmem:[%s3712_s15 + $0x48] sm:$0xff] %v2245_v57 }
 0x232   : > { %2335 = vxpose.xlu2.b32.cont [13/16] %v1463_v0, 128 }
 0x233   : > { %2304 = vxpose.xlu1.b32.cont [14/16] %v1127_v2, 128  ;;  %v2276_v50 = vpop.trf.xlu0 }
 0x234   : > { %2488 = vst [vmem:[%s3712_s15 + $0x228] sm:$0xff] %v2276_v50 }
 0x236   : > { %v1295_v9 = vpop.f32.mrf.mxu2  ;;  %v960_v12 = vpop.f32.mrf.mxu0 }
 0x237   : > { %v1464_v11 = vpop.f32.mrf.mxu3  ;;  %v1129_v15 = vpop.f32.mrf.mxu1 }
 0x238   : > { %v1465_v14 = vadd.f32 %v1464_v11, %v1295_v9  ;;  %v1130_v16 = vadd.f32 %v1129_v15, %v960_v12  ;;  %v2246_v1 = vpop.trf.xlu2 }
 0x239   : > { %999 = vmatmul.bf16.gmra.mxu0 %v2958_v10  ;;  %2432 = vst [vmem:[%s3712_s15 + $0x68] sm:$0xff] %v2246_v1 }
 0x23a   : > { %2336 = vxpose.xlu2.b32.cont [14/16] %v1465_v14, 128  ;;  %1168 = vmatmul.bf16.gmra.mxu1 %v2962_v13 }
 0x23b   : > { %1337 = vmatmul.bf16.gmra.mxu2 %v2958_v10  ;;  %2305 = vxpose.xlu1.b32.cont [15/16] %v1130_v16, 128  ;;  %v2277_v58 = vpop.trf.xlu0 }
 0x23c   : > { %1506 = vmatmul.bf16.gmra.mxu3 %v2962_v13  ;;  %2492 = vst [vmem:[%s3712_s15 + $0x248] sm:$0xff] %v2277_v58 }
 0x23e   : > { %v1298_v19 = vpop.f32.mrf.mxu2  ;;  %v962_v21 = vpop.f32.mrf.mxu0 }
 0x23f   : > { %v1467_v20 = vpop.f32.mrf.mxu3  ;;  %v1131_v23 = vpop.f32.mrf.mxu1 }
 0x240   : > { %v1468_v22 = vadd.f32 %v1467_v20, %v1298_v19  ;;  %v1132_v24 = vadd.f32 %v1131_v23, %v962_v21  ;;  %v2247_v10 = vpop.trf.xlu2 }
 0x241   : > { %2436 = vst [vmem:[%s3712_s15 + $0x88] sm:$0xff] %v2247_v10 }
 0x242   : > { %2337 = vxpose.xlu2.b32.cont [15/16] %v1468_v22, 128 }
 0x243   : > { %2306 = vxpose.xlu1.b32.end [16/16] %v1132_v24, 128  ;;  %v2278_v2 = vpop.trf.xlu0 }
 0x244   : > { %2496 = vst [vmem:[%s3712_s15 + $0x268] sm:$0xff] %v2278_v2 }
 0x246   : > { %v1300_v27 = vpop.f32.mrf.mxu2  ;;  %v965_v29 = vpop.f32.mrf.mxu0 }
 0x247   : > { %v1469_v28 = vpop.f32.mrf.mxu3  ;;  %v1134_v31 = vpop.f32.mrf.mxu1 }
 0x248   : > { %v1470_v30 = vadd.f32 %v1469_v28, %v1300_v27  ;;  %v1135_v32 = vadd.f32 %v1134_v31, %v965_v29  ;;  %v2248_v19 = vpop.trf.xlu2 }
 0x249   : > { %2440 = vst [vmem:[%s3712_s15 + $0xa8] sm:$0xff] %v2248_v19 }
 0x24a   : > { %2338 = vxpose.xlu2.b32.end [16/16] %v1470_v30, 128  ;;  %2355 = vxpose.xlu0.b32.start [1/16] %v1135_v32, 128 }
 0x24b   : > { %v2279_v11 = vpop.trf.xlu0 }
 0x24c   : > { %2500 = vst [vmem:[%s3712_s15 + $0x288] sm:$0xff] %v2279_v11 }
 0x24e   : > { %v1303_v35 = vpop.f32.mrf.mxu2  ;;  %v967_v37 = vpop.f32.mrf.mxu0 }
 0x24f   : > { %v1472_v36 = vpop.f32.mrf.mxu3  ;;  %v1136_v39 = vpop.f32.mrf.mxu1 }
 0x250   : > { %v1473_v38 = vadd.f32 %v1472_v36, %v1303_v35  ;;  %v1137_v40 = vadd.f32 %v1136_v39, %v967_v37  ;;  %v2249_v28 = vpop.trf.xlu2 }
 0x251   : > { %2444 = vst [vmem:[%s3712_s15 + $0xc8] sm:$0xff] %v2249_v28 }
 0x252   : > { %2387 = vxpose.xlu1.b32.start [1/16] %v1473_v38, 128  ;;  %2356 = vxpose.xlu0.b32.cont [2/16] %v1137_v40, 128 }
 0x253   : > { %v2280_v20 = vpop.trf.xlu0 }
 0x254   : > { %2504 = vst [vmem:[%s3712_s15 + $0x2a8] sm:$0xff] %v2280_v20 }
 0x256   : > { %v1305_v43 = vpop.f32.mrf.mxu2  ;;  %v970_v45 = vpop.f32.mrf.mxu0 }
 0x257   : > { %v1474_v44 = vpop.f32.mrf.mxu3  ;;  %v1139_v47 = vpop.f32.mrf.mxu1 }
 0x258   : > { %v1475_v46 = vadd.f32 %v1474_v44, %v1305_v43  ;;  %v1140_v48 = vadd.f32 %v1139_v47, %v970_v45  ;;  %v2250_v37 = vpop.trf.xlu2 }
 0x259   : > { %2448 = vst [vmem:[%s3712_s15 + $0xe8] sm:$0xff] %v2250_v37 }
 0x25a   : > { %2388 = vxpose.xlu1.b32.cont [2/16] %v1475_v46, 128  ;;  %2357 = vxpose.xlu0.b32.cont [3/16] %v1140_v48, 128 }
 0x25b   : > { %v2281_v29 = vpop.trf.xlu0 }
 0x25c   : > { %2508 = vst [vmem:[%s3712_s15 + $0x2c8] sm:$0xff] %v2281_v29 }
 0x25e   : > { %v1308_v51 = vpop.f32.mrf.mxu2  ;;  %v972_v53 = vpop.f32.mrf.mxu0 }
 0x25f   : > { %v1477_v52 = vpop.f32.mrf.mxu3  ;;  %v1141_v55 = vpop.f32.mrf.mxu1 }
 0x260   : > { %v1478_v54 = vadd.f32 %v1477_v52, %v1308_v51  ;;  %v1142_v56 = vadd.f32 %v1141_v55, %v972_v53  ;;  %v2251_v46 = vpop.trf.xlu2 }
 0x261   : > { %2452 = vst [vmem:[%s3712_s15 + $0x108] sm:$0xff] %v2251_v46 }
 0x262   : > { %2389 = vxpose.xlu1.b32.cont [3/16] %v1478_v54, 128  ;;  %2358 = vxpose.xlu0.b32.cont [4/16] %v1142_v56, 128 }
 0x263   : > { %v2282_v38 = vpop.trf.xlu0 }
 0x264   : > { %2512 = vst [vmem:[%s3712_s15 + $0x2e8] sm:$0xff] %v2282_v38 }
 0x266   : > { %v1310_v59 = vpop.f32.mrf.mxu2  ;;  %v975_v61 = vpop.f32.mrf.mxu0 }
 0x267   : > { %v1479_v60 = vpop.f32.mrf.mxu3  ;;  %v1144_v63 = vpop.f32.mrf.mxu1 }
 0x268   : > { %v1480_v62 = vadd.f32 %v1479_v60, %v1310_v59  ;;  %v1145_v0 = vadd.f32 %v1144_v63, %v975_v61  ;;  %v2252_v55 = vpop.trf.xlu2 }
 0x269   : > { %2456 = vst [vmem:[%s3712_s15 + $0x128] sm:$0xff] %v2252_v55 }
 0x26a   : > { %2390 = vxpose.xlu1.b32.cont [4/16] %v1480_v62, 128  ;;  %2359 = vxpose.xlu0.b32.cont [5/16] %v1145_v0, 128 }
 0x26b   : > { %v2283_v47 = vpop.trf.xlu0 }
 0x26c   : > { %2516 = vst [vmem:[%s3712_s15 + $0x308] sm:$0xff] %v2283_v47 }
 0x26e   : > { %v1313_v3 = vpop.f32.mrf.mxu2  ;;  %v977_v5 = vpop.f32.mrf.mxu0 }
 0x26f   : > { %v1482_v4 = vpop.f32.mrf.mxu3  ;;  %v1146_v7 = vpop.f32.mrf.mxu1 }
 0x270   : > { %v1483_v6 = vadd.f32 %v1482_v4, %v1313_v3  ;;  %v2307_v8 = vpop.trf.xlu1  ;;  %v1147_v9 = vadd.f32 %v1146_v7, %v977_v5  ;;  %v2253_v0 = vpop.trf.xlu2 }
 0x271   : > { %2421 = vst [vmem:[%s3712_s15 + $0x10] sm:$0xff] %v2307_v8 }
 0x272   : > { %2391 = vxpose.xlu1.b32.cont [5/16] %v1483_v6, 128  ;;  %2360 = vxpose.xlu0.b32.cont [6/16] %v1147_v9, 128  ;;  %2460 = vst [vmem:[%s3712_s15 + $0x148] sm:$0xff] %v2253_v0 }
 0x273   : > { %v2284_v56 = vpop.trf.xlu0 }
 0x274   : > { %2520 = vst [vmem:[%s3712_s15 + $0x328] sm:$0xff] %v2284_v56 }
 0x276   : > { %v1315_v12 = vpop.f32.mrf.mxu2  ;;  %v980_v14 = vpop.f32.mrf.mxu0 }
 0x277   : > { %v1484_v13 = vpop.f32.mrf.mxu3  ;;  %v1149_v16 = vpop.f32.mrf.mxu1 }
 0x278   : > { %v1485_v15 = vadd.f32 %v1484_v13, %v1315_v12  ;;  %v2308_v17 = vpop.trf.xlu1  ;;  %v1150_v18 = vadd.f32 %v1149_v16, %v980_v14  ;;  %v2254_v9 = vpop.trf.xlu2 }
 0x279   : > { %2425 = vst [vmem:[%s3712_s15 + $0x30] sm:$0xff] %v2308_v17 }
 0x27a   : > { %2392 = vxpose.xlu1.b32.cont [6/16] %v1485_v15, 128  ;;  %2361 = vxpose.xlu0.b32.cont [7/16] %v1150_v18, 128  ;;  %2464 = vst [vmem:[%s3712_s15 + $0x168] sm:$0xff] %v2254_v9 }
 0x27b   : > { %v2285_v1 = vpop.trf.xlu0 }
 0x27c   : > { %2524 = vst [vmem:[%s3712_s15 + $0x348] sm:$0xff] %v2285_v1 }
 0x27e   : > { %v1318_v21 = vpop.f32.mrf.mxu2  ;;  %v982_v23 = vpop.f32.mrf.mxu0 }
 0x27f   : > { %v1487_v22 = vpop.f32.mrf.mxu3  ;;  %v1151_v25 = vpop.f32.mrf.mxu1 }
 0x280   : > { %v1488_v24 = vadd.f32 %v1487_v22, %v1318_v21  ;;  %v2309_v26 = vpop.trf.xlu1  ;;  %v1152_v27 = vadd.f32 %v1151_v25, %v982_v23  ;;  %v2255_v18 = vpop.trf.xlu2 }
 0x281   : > { %2429 = vst [vmem:[%s3712_s15 + $0x50] sm:$0xff] %v2309_v26 }
 0x282   : > { %2393 = vxpose.xlu1.b32.cont [7/16] %v1488_v24, 128  ;;  %2362 = vxpose.xlu0.b32.cont [8/16] %v1152_v27, 128  ;;  %2468 = vst [vmem:[%s3712_s15 + $0x188] sm:$0xff] %v2255_v18 }
 0x283   : > { %v2286_v10 = vpop.trf.xlu0 }
 0x284   : > { %2528 = vst [vmem:[%s3712_s15 + $0x368] sm:$0xff] %v2286_v10 }
 0x286   : > { %v1320_v30 = vpop.f32.mrf.mxu2  ;;  %v985_v32 = vpop.f32.mrf.mxu0 }
 0x287   : > { %v1489_v31 = vpop.f32.mrf.mxu3  ;;  %v1154_v34 = vpop.f32.mrf.mxu1 }
 0x288   : > { %v1490_v33 = vadd.f32 %v1489_v31, %v1320_v30  ;;  %v2310_v35 = vpop.trf.xlu1  ;;  %v1155_v36 = vadd.f32 %v1154_v34, %v985_v32  ;;  %v2256_v27 = vpop.trf.xlu2 }
 0x289   : > { %2433 = vst [vmem:[%s3712_s15 + $0x70] sm:$0xff] %v2310_v35 }
 0x28a   : > { %2394 = vxpose.xlu1.b32.cont [8/16] %v1490_v33, 128  ;;  %2363 = vxpose.xlu0.b32.cont [9/16] %v1155_v36, 128  ;;  %2472 = vst [vmem:[%s3712_s15 + $0x1a8] sm:$0xff] %v2256_v27 }
 0x28b   : > { %v2287_v19 = vpop.trf.xlu0 }
 0x28c   : > { %2532 = vst [vmem:[%s3712_s15 + $0x388] sm:$0xff] %v2287_v19 }
 0x28e   : > { %v1323_v39 = vpop.f32.mrf.mxu2  ;;  %v987_v41 = vpop.f32.mrf.mxu0 }
 0x28f   : > { %v1492_v40 = vpop.f32.mrf.mxu3  ;;  %v1156_v43 = vpop.f32.mrf.mxu1 }
 0x290   : > { %v1493_v42 = vadd.f32 %v1492_v40, %v1323_v39  ;;  %v2311_v44 = vpop.trf.xlu1  ;;  %v1157_v45 = vadd.f32 %v1156_v43, %v987_v41  ;;  %v2257_v36 = vpop.trf.xlu2 }
 0x291   : > { %2437 = vst [vmem:[%s3712_s15 + $0x90] sm:$0xff] %v2311_v44 }
 0x292   : > { %2395 = vxpose.xlu1.b32.cont [9/16] %v1493_v42, 128  ;;  %2364 = vxpose.xlu0.b32.cont [10/16] %v1157_v45, 128  ;;  %2476 = vst [vmem:[%s3712_s15 + $0x1c8] sm:$0xff] %v2257_v36 }
 0x293   : > { %v2288_v28 = vpop.trf.xlu0 }
 0x294   : > { %2536 = vst [vmem:[%s3712_s15 + $0x3a8] sm:$0xff] %v2288_v28 }
 0x296   : > { %v1325_v48 = vpop.f32.mrf.mxu2  ;;  %v990_v50 = vpop.f32.mrf.mxu0 }
 0x297   : > { %v1494_v49 = vpop.f32.mrf.mxu3  ;;  %v1159_v52 = vpop.f32.mrf.mxu1 }
 0x298   : > { %v1495_v51 = vadd.f32 %v1494_v49, %v1325_v48  ;;  %v2312_v53 = vpop.trf.xlu1  ;;  %v1160_v54 = vadd.f32 %v1159_v52, %v990_v50  ;;  %v2258_v42 = vpop.trf.xlu2 }
 0x299   : > { %2441 = vst [vmem:[%s3712_s15 + $0xb0] sm:$0xff] %v2312_v53 }
 0x29a   : > { %2396 = vxpose.xlu1.b32.cont [10/16] %v1495_v51, 128  ;;  %2365 = vxpose.xlu0.b32.cont [11/16] %v1160_v54, 128  ;;  %2480 = vst [vmem:[%s3712_s15 + $0x1e8] sm:$0xff] %v2258_v42 }
 0x29b   : > { %v2289_v37 = vpop.trf.xlu0 }
 0x29c   : > { %2540 = vst [vmem:[%s3712_s15 + $0x3c8] sm:$0xff] %v2289_v37 }
 0x29e   : > { %v1328_v57 = vpop.f32.mrf.mxu2  ;;  %v992_v59 = vpop.f32.mrf.mxu0 }
 0x29f   : > { %v1497_v58 = vpop.f32.mrf.mxu3  ;;  %v1161_v61 = vpop.f32.mrf.mxu1 }
 0x2a0   : > { %v1498_v60 = vadd.f32 %v1497_v58, %v1328_v57  ;;  %v2313_v62 = vpop.trf.xlu1  ;;  %v1162_v63 = vadd.f32 %v1161_v61, %v992_v59  ;;  %v2339_v45 = vpop.trf.xlu2 }
 0x2a1   : > { %2445 = vst [vmem:[%s3712_s15 + $0xd0] sm:$0xff] %v2313_v62 }
 0x2a2   : > { %2397 = vxpose.xlu1.b32.cont [11/16] %v1498_v60, 128  ;;  %2366 = vxpose.xlu0.b32.cont [12/16] %v1162_v63, 128  ;;  %2485 = vst [vmem:[%s3712_s15 + $0x210] sm:$0xff] %v2339_v45 }
 0x2a3   : > { %v2290_v43 = vpop.trf.xlu0 }
 0x2a4   : > { %2544 = vst [vmem:[%s3712_s15 + $0x3e8] sm:$0xff] %v2290_v43 }
 0x2a6   : > { %v1330_v2 = vpop.f32.mrf.mxu2  ;;  %v995_v4 = vpop.f32.mrf.mxu0 }
 0x2a7   : > { %v1499_v3 = vpop.f32.mrf.mxu3  ;;  %v1164_v6 = vpop.f32.mrf.mxu1 }
 0x2a8   : > { %v1500_v5 = vadd.f32 %v1499_v3, %v1330_v2  ;;  %v2314_v7 = vpop.trf.xlu1  ;;  %v1165_v8 = vadd.f32 %v1164_v6, %v995_v4  ;;  %v2340_v47 = vpop.trf.xlu2 }
 0x2a9   : > { %2449 = vst [vmem:[%s3712_s15 + $0xf0] sm:$0xff] %v2314_v7 }
 0x2aa   : > { %2398 = vxpose.xlu1.b32.cont [12/16] %v1500_v5, 128  ;;  %2367 = vxpose.xlu0.b32.cont [13/16] %v1165_v8, 128  ;;  %2489 = vst [vmem:[%s3712_s15 + $0x230] sm:$0xff] %v2340_v47 }
 0x2ae   : > { %v1333_v11 = vpop.f32.mrf.mxu2  ;;  %v997_v13 = vpop.f32.mrf.mxu0 }
 0x2af   : > { %v1502_v12 = vpop.f32.mrf.mxu3  ;;  %v1166_v15 = vpop.f32.mrf.mxu1 }
 0x2b0   : > { %v1503_v14 = vadd.f32 %v1502_v12, %v1333_v11  ;;  %v2315_v16 = vpop.trf.xlu1  ;;  %v1167_v17 = vadd.f32 %v1166_v15, %v997_v13  ;;  %v2341_v49 = vpop.trf.xlu2 }
 0x2b1   : > { %2453 = vst [vmem:[%s3712_s15 + $0x110] sm:$0xff] %v2315_v16 }
 0x2b2   : > { %2399 = vxpose.xlu1.b32.cont [13/16] %v1503_v14, 128  ;;  %2368 = vxpose.xlu0.b32.cont [14/16] %v1167_v17, 128  ;;  %2493 = vst [vmem:[%s3712_s15 + $0x250] sm:$0xff] %v2341_v49 }
 0x2b6   : > { %v1335_v20 = vpop.f32.mrf.mxu2  ;;  %v1000_v22 = vpop.f32.mrf.mxu0 }
 0x2b7   : > { %v1504_v21 = vpop.f32.mrf.mxu3  ;;  %v1169_v24 = vpop.f32.mrf.mxu1 }
 0x2b8   : > { %v1505_v23 = vadd.f32 %v1504_v21, %v1335_v20  ;;  %v2316_v25 = vpop.trf.xlu1  ;;  %v1170_v26 = vadd.f32 %v1169_v24, %v1000_v22  ;;  %v2342_v51 = vpop.trf.xlu2 }
 0x2b9   : > { %2457 = vst [vmem:[%s3712_s15 + $0x130] sm:$0xff] %v2316_v25 }
 0x2ba   : > { %2400 = vxpose.xlu1.b32.cont [14/16] %v1505_v23, 128  ;;  %2369 = vxpose.xlu0.b32.cont [15/16] %v1170_v26, 128  ;;  %2497 = vst [vmem:[%s3712_s15 + $0x270] sm:$0xff] %v2342_v51 }
 0x2be   : > { %v1338_v29 = vpop.f32.mrf.mxu2  ;;  %v1002_v31 = vpop.f32.mrf.mxu0 }
 0x2bf   : > { %v1507_v30 = vpop.f32.mrf.mxu3  ;;  %v1171_v33 = vpop.f32.mrf.mxu1 }
 0x2c0   : > { %v1508_v32 = vadd.f32 %v1507_v30, %v1338_v29  ;;  %v2317_v34 = vpop.trf.xlu1  ;;  %v1172_v35 = vadd.f32 %v1171_v33, %v1002_v31  ;;  %v2343_v54 = vpop.trf.xlu2 }
 0x2c1   : > { %2461 = vst [vmem:[%s3712_s15 + $0x150] sm:$0xff] %v2317_v34 }
 0x2c2   : > { %2401 = vxpose.xlu1.b32.cont [15/16] %v1508_v32, 128  ;;  %2370 = vxpose.xlu0.b32.end [16/16] %v1172_v35, 128  ;;  %2501 = vst [vmem:[%s3712_s15 + $0x290] sm:$0xff] %v2343_v54 }
 0x2c6   : > { %v1340_v38 = vpop.f32.mrf.mxu2 }
 0x2c7   : > { %v1509_v39 = vpop.f32.mrf.mxu3 }
 0x2c8   : > { %v1510_v40 = vadd.f32 %v1509_v39, %v1340_v38  ;;  %v2318_v41 = vpop.trf.xlu1  ;;  %v2344_v57 = vpop.trf.xlu2 }
 0x2c9   : > { %2465 = vst [vmem:[%s3712_s15 + $0x170] sm:$0xff] %v2318_v41 }
 0x2ca   : > { %2402 = vxpose.xlu1.b32.end [16/16] %v1510_v40, 128  ;;  %2505 = vst [vmem:[%s3712_s15 + $0x2b0] sm:$0xff] %v2344_v57 }
 0x2d0   : > { %v2319_v44 = vpop.trf.xlu1  ;;  %v2345_v60 = vpop.trf.xlu2 }
 0x2d1   : > { %2469 = vst [vmem:[%s3712_s15 + $0x190] sm:$0xff] %v2319_v44 }
 0x2d2   : > { %2509 = vst [vmem:[%s3712_s15 + $0x2d0] sm:$0xff] %v2345_v60 }
 0x2d8   : > { %v2320_v46 = vpop.trf.xlu1  ;;  %v2346_v63 = vpop.trf.xlu2 }
 0x2d9   : > { %2473 = vst [vmem:[%s3712_s15 + $0x1b0] sm:$0xff] %v2320_v46 }
 0x2da   : > { %2513 = vst [vmem:[%s3712_s15 + $0x2f0] sm:$0xff] %v2346_v63 }
 0x2e0   : > { %v2321_v48 = vpop.trf.xlu1  ;;  %v2347_v2 = vpop.trf.xlu2 }
 0x2e1   : > { %2477 = vst [vmem:[%s3712_s15 + $0x1d0] sm:$0xff] %v2321_v48 }
 0x2e2   : > { %2517 = vst [vmem:[%s3712_s15 + $0x310] sm:$0xff] %v2347_v2 }
 0x2e8   : > { %v2322_v50 = vpop.trf.xlu1  ;;  %v2348_v5 = vpop.trf.xlu2 }
 0x2e9   : > { %2481 = vst [vmem:[%s3712_s15 + $0x1f0] sm:$0xff] %v2322_v50 }
 0x2ea   : > { %2521 = vst [vmem:[%s3712_s15 + $0x330] sm:$0xff] %v2348_v5 }
 0x2ee   : > { %v2371_v52 = vpop.trf.xlu0 }
 0x2ef   : > { %2422 = vst [vmem:[%s3712_s15 + $0x18] sm:$0xff] %v2371_v52 }
 0x2f0   : > { %v2349_v8 = vpop.trf.xlu2 }
 0x2f1   : > { %2525 = vst [vmem:[%s3712_s15 + $0x350] sm:$0xff] %v2349_v8 }
 0x2f6   : > { %v2403_v53 = vpop.trf.xlu1  ;;  %v2372_v55 = vpop.trf.xlu0 }
 0x2f7   : > { %2486 = vst [vmem:[%s3712_s15 + $0x218] sm:$0xff] %v2403_v53 }
 0x2f8   : > { %2426 = vst [vmem:[%s3712_s15 + $0x38] sm:$0xff] %v2372_v55  ;;  %v2350_v11 = vpop.trf.xlu2 }
 0x2f9   : > { %2529 = vst [vmem:[%s3712_s15 + $0x370] sm:$0xff] %v2350_v11 }
 0x2fe   : > { %v2404_v56 = vpop.trf.xlu1  ;;  %v2373_v58 = vpop.trf.xlu0 }
 0x2ff   : > { %2490 = vst [vmem:[%s3712_s15 + $0x238] sm:$0xff] %v2404_v56 }
 0x300   : > { %2430 = vst [vmem:[%s3712_s15 + $0x58] sm:$0xff] %v2373_v58  ;;  %v2351_v14 = vpop.trf.xlu2 }
 0x301   : > { %2533 = vst [vmem:[%s3712_s15 + $0x390] sm:$0xff] %v2351_v14 }
 0x306   : > { %v2405_v59 = vpop.trf.xlu1  ;;  %v2374_v61 = vpop.trf.xlu0 }
 0x307   : > { %2494 = vst [vmem:[%s3712_s15 + $0x258] sm:$0xff] %v2405_v59 }
 0x308   : > { %2434 = vst [vmem:[%s3712_s15 + $0x78] sm:$0xff] %v2374_v61  ;;  %v2352_v17 = vpop.trf.xlu2 }
 0x309   : > { %2537 = vst [vmem:[%s3712_s15 + $0x3b0] sm:$0xff] %v2352_v17 }
 0x30e   : > { %v2406_v62 = vpop.trf.xlu1  ;;  %v2375_v0 = vpop.trf.xlu0 }
 0x30f   : > { %2498 = vst [vmem:[%s3712_s15 + $0x278] sm:$0xff] %v2406_v62 }
 0x310   : > { %2438 = vst [vmem:[%s3712_s15 + $0x98] sm:$0xff] %v2375_v0  ;;  %v2353_v20 = vpop.trf.xlu2 }
 0x311   : > { %2541 = vst [vmem:[%s3712_s15 + $0x3d0] sm:$0xff] %v2353_v20 }
 0x316   : > { %v2407_v1 = vpop.trf.xlu1  ;;  %v2376_v3 = vpop.trf.xlu0 }
 0x317   : > { %2502 = vst [vmem:[%s3712_s15 + $0x298] sm:$0xff] %v2407_v1 }
 0x318   : > { %2442 = vst [vmem:[%s3712_s15 + $0xb8] sm:$0xff] %v2376_v3  ;;  %v2354_v23 = vpop.trf.xlu2 }
 0x319   : > { %2545 = vst [vmem:[%s3712_s15 + $0x3f0] sm:$0xff] %v2354_v23 }
 0x31e   : > { %v2408_v4 = vpop.trf.xlu1  ;;  %v2377_v6 = vpop.trf.xlu0 }
 0x31f   : > { %2506 = vst [vmem:[%s3712_s15 + $0x2b8] sm:$0xff] %v2408_v4 }
 0x320   : > { %2446 = vst [vmem:[%s3712_s15 + $0xd8] sm:$0xff] %v2377_v6 }
 0x326   : > { %v2409_v7 = vpop.trf.xlu1  ;;  %v2378_v9 = vpop.trf.xlu0 }
 0x327   : > { %2510 = vst [vmem:[%s3712_s15 + $0x2d8] sm:$0xff] %v2409_v7 }
 0x328   : > { %2450 = vst [vmem:[%s3712_s15 + $0xf8] sm:$0xff] %v2378_v9 }
 0x32e   : > { %v2410_v10 = vpop.trf.xlu1  ;;  %v2379_v12 = vpop.trf.xlu0 }
 0x32f   : > { %2514 = vst [vmem:[%s3712_s15 + $0x2f8] sm:$0xff] %v2410_v10 }
 0x330   : > { %2454 = vst [vmem:[%s3712_s15 + $0x118] sm:$0xff] %v2379_v12 }
 0x336   : > { %v2411_v13 = vpop.trf.xlu1  ;;  %v2380_v15 = vpop.trf.xlu0 }
 0x337   : > { %2518 = vst [vmem:[%s3712_s15 + $0x318] sm:$0xff] %v2411_v13 }
 0x338   : > { %2458 = vst [vmem:[%s3712_s15 + $0x138] sm:$0xff] %v2380_v15 }
 0x33e   : > { %v2412_v16 = vpop.trf.xlu1  ;;  %v2381_v18 = vpop.trf.xlu0 }
 0x33f   : > { %2522 = vst [vmem:[%s3712_s15 + $0x338] sm:$0xff] %v2412_v16 }
 0x340   : > { %2462 = vst [vmem:[%s3712_s15 + $0x158] sm:$0xff] %v2381_v18 }
 0x346   : > { %v2413_v19 = vpop.trf.xlu1  ;;  %v2382_v21 = vpop.trf.xlu0 }
 0x347   : > { %2526 = vst [vmem:[%s3712_s15 + $0x358] sm:$0xff] %v2413_v19 }
 0x348   : > { %2466 = vst [vmem:[%s3712_s15 + $0x178] sm:$0xff] %v2382_v21 }
 0x34e   : > { %v2414_v22 = vpop.trf.xlu1  ;;  %v2383_v24 = vpop.trf.xlu0 }
 0x34f   : > { %2530 = vst [vmem:[%s3712_s15 + $0x378] sm:$0xff] %v2414_v22 }
 0x350   : > { %2470 = vst [vmem:[%s3712_s15 + $0x198] sm:$0xff] %v2383_v24 }
 0x356   : > { %v2415_v25 = vpop.trf.xlu1  ;;  %v2384_v26 = vpop.trf.xlu0 }
 0x357   : > { %2534 = vst [vmem:[%s3712_s15 + $0x398] sm:$0xff] %v2415_v25 }
 0x358   : > { %2474 = vst [vmem:[%s3712_s15 + $0x1b8] sm:$0xff] %v2384_v26 }
 0x35e   : > { %v2416_v27 = vpop.trf.xlu1  ;;  %v2385_v28 = vpop.trf.xlu0 }
 0x35f   : > { %2538 = vst [vmem:[%s3712_s15 + $0x3b8] sm:$0xff] %v2416_v27 }
 0x360   : > { %2478 = vst [vmem:[%s3712_s15 + $0x1d8] sm:$0xff] %v2385_v28 }
 0x366   : > { %v2417_v29 = vpop.trf.xlu1  ;;  %v2386_v30 = vpop.trf.xlu0 }
 0x367   : > { %2542 = vst [vmem:[%s3712_s15 + $0x3d8] sm:$0xff] %v2417_v29 }
 0x368   : > { %2482 = vst [vmem:[%s3712_s15 + $0x1f8] sm:$0xff] %v2386_v30 }
 0x36e   : > { %v2418_v31 = vpop.trf.xlu1 }
 0x36f   : > { %2546 = vst [vmem:[%s3712_s15 + $0x3f8] sm:$0xff] %v2418_v31 }
 0x370   : > { %3353 = shalt.err (!%p3350_p13)
}
 0x371   : > { %s3416_s3 = smov 512   ;;  %s3417_s6 = smov 32  }
 0x372   : > { %3199 = dma.vmem_to_hbm [thread:$0]  (%p3484_p9), %s2566_s19, 16384, %s2568_s27, %s2548_s28, %s3416_s3, %s3416_s3, %s3417_s6  }
 0x373 PF: > { %s2582_s8 = sand.u32 1, %s3392_s9   ;;  %p3209_p0 = pnand %p2696_p12, %p3491_p11 }
 0x374   : > { %s2583_s21 = scalar_lea.sflag [#allocation5], %s2582_s8 }
 0x375   : > { %p3210_p1 = pneg %p3209_p0 }
 0x377   : > { %3387 = dma.done.wait (%p3210_p1), %s2583_s21, 16384  }
 0x378   : > { %3389 = vsyncadd (%p3210_p1), %s2583_s21, 4294950912  ;;  %s21_s14 = sadd.s32 1, %s3412_s14   ;;  %s3913_s9 = smov %s3396_s10 }
 0x379   : > { %p18_p2 = scmp.ge.s32.totalorder %s21_s14, 4   ;;  %s3914_s10 = smov %s3400_s11 }
 0x37a   : > { %s3915_s11 = smov %s3489_s23  ;;  %s3916_s12 = smov %s3408_s13 }
 0x37b   : > { %s3917_s13 = smov %s3919_s17  ;;  %20 = sbr.rel (!%p18_p2) target bundleno = 8 (0x8), region = 98 }
 0x380   :  { %2589 = vsyncpa [#allocation4], 1 }
 0x381   :  { %2591 = vsyncpa [#allocation4 + $0x1], 1 }
 0x382   :  { %2592 = vsyncpa [#allocation7], 1 }
 0x383   :  { %2594 = vsyncpa [#allocation7 + $0x1], 1 }
 0x384   :  { %2595 = vsyncpa [#allocation5], 1 }
 0x385   :  { %2597 = vsyncpa [#allocation5 + $0x1], 1 }

</bundles_post_ra>
